<compile_context>
chip_gen: v7x
topology: tpu7x:2x2x1
jax: 0.10.0
libtpu: 0.0.40
codegen_flags: <defaults>
</compile_context>

<pallas_src>
import jax
import jax.numpy as jnp
from jax import lax
from jax.experimental import pallas as pl
from jax.experimental.pallas import tpu as pltpu


def se_block_fused_kernel(x_ref, w1_ref, b1_ref, w2_ref, b2_ref, o_ref,
                          xpad, f1pad):
    # x_ref : (nb, H, W, Cin)      unpadded NHWC activation block
    # w1_ref: (9, Cin, C1)         conv1 weights, one (Cin, C1) slab per tap
    # b1_ref: (1, C1)
    # w2_ref: (9, C1, C2)          conv2 weights, one (C1, C2) slab per tap
    # b2_ref: (1, C2)
    # o_ref : (nb, C2)             softmaxed channel vector per sample
    # xpad  : VMEM (nb, H+2, W+2, Cin)    f1pad: VMEM (nb, H+2, W+2, C1)
    nb, H, W, cin = x_ref.shape
    c1 = w1_ref.shape[-1]
    c2 = w2_ref.shape[-1]
    hw = H * W
    m = nb * hw
    f32 = jnp.float32

    # ---- zero ONLY the 1-pixel halo of both padded scratches ----------------
    # (the interior is fully overwritten below before any tap reads it)
    xpad[:, 0:1, :, :] = jnp.zeros((nb, 1, W + 2, cin), f32)
    xpad[:, H + 1:H + 2, :, :] = jnp.zeros((nb, 1, W + 2, cin), f32)
    xpad[:, 1:H + 1, 0:1, :] = jnp.zeros((nb, H, 1, cin), f32)
    xpad[:, 1:H + 1, W + 1:W + 2, :] = jnp.zeros((nb, H, 1, cin), f32)

    f1pad[:, 0:1, :, :] = jnp.zeros((nb, 1, W + 2, c1), f32)
    f1pad[:, H + 1:H + 2, :, :] = jnp.zeros((nb, 1, W + 2, c1), f32)
    f1pad[:, 1:H + 1, 0:1, :] = jnp.zeros((nb, H, 1, c1), f32)
    f1pad[:, 1:H + 1, W + 1:W + 2, :] = jnp.zeros((nb, H, 1, c1), f32)

    # ---- input interior into VMEM (padding lives only on-chip) --------------
    xpad[:, 1:H + 1, 1:W + 1, :] = x_ref[...]

    # ---- conv1: 9-tap accumulation, no im2col concatenate -------------------
    f1 = jnp.zeros((m, c1), f32)
    for kh in range(3):
        for kw in range(3):
            tap = xpad[:, kh:kh + H, kw:kw + W, :].reshape(m, cin)
            f1 = f1 + jnp.dot(tap, w1_ref[3 * kh + kw],
                              preferred_element_type=f32)
    f1 = f1 + b1_ref[...]
    f1 = jnp.where(f1 > 0, f1, 0.01 * f1)                     # leaky_relu(0.01)

    # ---- f1 never leaves the chip: padded VMEM scratch for conv2 ------------
    f1pad[:, 1:H + 1, 1:W + 1, :] = f1.reshape(nb, H, W, c1)

    # ---- conv2: 9-tap accumulation -------------------------------------------
    f2 = jnp.zeros((m, c2), f32)
    for kh in range(3):
        for kw in range(3):
            tap = f1pad[:, kh:kh + H, kw:kw + W, :].reshape(m, c1)
            f2 = f2 + jnp.dot(tap, w2_ref[3 * kh + kw],
                              preferred_element_type=f32)
    f2 = jnp.maximum(f2 + b2_ref[...], 0.0)                   # relu

    # ---- per-sample spatial mean + softmax over channels ---------------------
    v = jnp.mean(f2.reshape(nb, hw, c2), axis=1)              # (nb, C2)
    v = v - jnp.max(v, axis=-1, keepdims=True)
    e = jnp.exp(v)
    s = jnp.sum(e, axis=-1, keepdims=True)
    # exact reciprocal: keeps 1e-5 parity with the f32 reference; cost is nil.
    o_ref[...] = e * pl.reciprocal(s, approx=False)


def _dual_tensorcore_chip():
    """True only on chips with 2 TensorCores (v7x); v5e/v6e have 1."""
    try:
        kind = jax.devices()[0].device_kind.lower().replace(" ", "")
    except Exception:
        return False
    return ("v7" in kind) or ("tpu7" in kind)


def se_block_forward_nhwc(x_nhwc, w1, b1, w2, b2, *, samples_per_block=None):
    """x_nhwc: (N, H, W, 64) float32 -> (N, 64) softmaxed channel vectors."""
    N, H, W, C = x_nhwc.shape
    c1 = w1.shape[-1]   # 8
    c2 = w2.shape[-1]   # 64

    if samples_per_block is None:
        if _dual_tensorcore_chip() and N >= 2 and N % 2 == 0:
            # v7x: one "parallel" chunk per TensorCore.
            samples_per_block = N // 2
        else:
            # v5e / v6e: single TC -> one grid step, whole batch in matmul M.
            samples_per_block = N
    nb = samples_per_block
    if N % nb != 0:
        nb = N           # fewest steps is best; VMEM is a non-issue here
    steps = N // nb

    x = x_nhwc.astype(jnp.float32)
    # Tap-major weight layout: w[t] = (Cin, Cout) for tap t = 3*kh + kw (HWIO).
    w1r = w1.reshape(9, C, c1).astype(jnp.float32)
    w2r = w2.reshape(9, c1, c2).astype(jnp.float32)
    b1r = b1.reshape(1, c1).astype(jnp.float32)
    b2r = b2.reshape(1, c2).astype(jnp.float32)

    cost = pl.CostEstimate(
        flops=2 * N * H * W * (9 * C * c1 + 9 * c1 * c2),
        transcendentals=N * c2,
        bytes_accessed=4 * (N * H * W * C + 9 * C * c1 + 9 * c1 * c2
                            + c1 + c2 + N * c2),
    )

    out = pl.pallas_call(
        se_block_fused_kernel,
        out_shape=jax.ShapeDtypeStruct((N, c2), jnp.float32),
        grid=(steps,),
        in_specs=[
            pl.BlockSpec((nb, H, W, C), lambda i: (i, 0, 0, 0)),
            pl.BlockSpec((9, C, c1), lambda i: (0, 0, 0)),
            pl.BlockSpec((1, c1), lambda i: (0, 0)),
            pl.BlockSpec((9, c1, c2), lambda i: (0, 0, 0)),
            pl.BlockSpec((1, c2), lambda i: (0, 0)),
        ],
        out_specs=pl.BlockSpec((nb, c2), lambda i: (i, 0)),
        scratch_shapes=[
            pltpu.VMEM((nb, H + 2, W + 2, C), jnp.float32),   # padded input
            pltpu.VMEM((nb, H + 2, W + 2, c1), jnp.float32),  # padded f1
        ],
        compiler_params=pltpu.CompilerParams(
            dimension_semantics=("parallel",)),
        cost_estimate=cost,
    )(x, w1r, b1r, w2r, b2r)

    return out


def se_block_forward(img_nchw, w1, b1, w2, b2, **kw):
    """PyTorch-convention entry: img (N, 64, H, W) -> (N, 64, 1, 1)."""
    x = jnp.transpose(img_nchw, (0, 2, 3, 1))          # NCHW -> NHWC (tiny)
    v = se_block_forward_nhwc(x, w1, b1, w2, b2, **kw)
    return v.reshape(v.shape[0], v.shape[1], 1, 1)


def _reference(img_nchw, w1, b1, w2, b2):
    """Pure-JAX reference (lax.conv) for correctness checking."""
    dn = ("NHWC", "HWIO", "NHWC")
    x = jnp.transpose(img_nchw, (0, 2, 3, 1)).astype(jnp.float32)
    f1 = lax.conv_general_dilated(x, w1, (1, 1), ((1, 1), (1, 1)),
                                  dimension_numbers=dn) + b1.reshape(1, 1, 1, -1)
    f1 = jnp.where(f1 > 0, f1, 0.01 * f1)
    f2 = lax.conv_general_dilated(f1, w2, (1, 1), ((1, 1), (1, 1)),
                                  dimension_numbers=dn) + b2.reshape(1, 1, 1, -1)
    f2 = jnp.maximum(f2, 0.0)
    v = jax.nn.softmax(jnp.mean(f2, axis=(1, 2)), axis=-1)
    return v.reshape(v.shape[0], v.shape[1], 1, 1)


if __name__ == "__main__":
    key = jax.random.PRNGKey(0)
    k_img, k_w1, k_b1, k_w2, k_b2 = jax.random.split(key, 5)

    N, C, H, W = 2, 64, 8, 8        # SEBlock requires 64 input channels
    img = jax.random.normal(k_img, (N, C, H, W), jnp.float32)

    # Deterministic synthetic parameters (HWIO layout, PyTorch bias shape).
    w1 = jax.random.normal(k_w1, (3, 3, 64, 8), jnp.float32) * 0.1
    b1 = jax.random.normal(k_b1, (8,), jnp.float32) * 0.1
    w2 = jax.random.normal(k_w2, (3, 3, 8, 64), jnp.float32) * 0.1
    b2 = jax.random.normal(k_b2, (64,), jnp.float32) * 0.1

    out = jax.jit(se_block_forward)(img, w1, b1, w2, b2)
    jax.block_until_ready(out)

    ref = _reference(img, w1, b1, w2, b2)
    assert out.shape == (N, 64, 1, 1), out.shape
    assert jnp.allclose(out, ref, atol=1e-5, rtol=1e-5), "mismatch vs reference"
    assert jnp.allclose(jnp.sum(out, axis=1), 1.0, atol=1e-5), "softmax not normalized"

    print("KERNEL_OK")
</pallas_src>

<mosaic_0001>
module attributes {stable_mosaic.version = 11 : i64} {
  func.func @se_block_fused_kernel(%arg0: i32, %arg1: memref<2x8x8x64xf32, #tpu.memory_space<vmem>>, %arg2: memref<9x64x8xf32, #tpu.memory_space<vmem>>, %arg3: memref<1x8xf32, #tpu.memory_space<vmem>>, %arg4: memref<9x8x64xf32, #tpu.memory_space<vmem>>, %arg5: memref<1x64xf32, #tpu.memory_space<vmem>>, %arg6: memref<2x64xf32, #tpu.memory_space<vmem>>, %arg7: memref<2x10x10x64xf32, #tpu.memory_space<vmem>>, %arg8: memref<2x10x10x8xf32, #tpu.memory_space<vmem>>) attributes {dimension_semantics = [#tpu.dimension_semantics<parallel>], iteration_bounds = array<i64: 1>, scalar_prefetch = 0 : i64, scratch_operands = 2 : i64, tpu.core_type = #tpu.core_type<tc>, window_params = [{transform_indices = @transform_0, window_bounds = array<i64: 2, 8, 8, 64>}, {pipeline_mode = #tpu.pipeline_mode<synchronous>, transform_indices = @transform_1, window_bounds = array<i64: 9, 64, 8>}, {pipeline_mode = #tpu.pipeline_mode<synchronous>, transform_indices = @transform_2, window_bounds = array<i64: 1, 8>}, {pipeline_mode = #tpu.pipeline_mode<synchronous>, transform_indices = @transform_3, window_bounds = array<i64: 9, 8, 64>}, {pipeline_mode = #tpu.pipeline_mode<synchronous>, transform_indices = @transform_4, window_bounds = array<i64: 1, 64>}, {transform_indices = @transform_5, window_bounds = array<i64: 2, 64>}]} {
    %cst = arith.constant 0.000000e+00 : f32
    %0 = vector.broadcast %cst : f32 to vector<2x1x10x64xf32>
    %c0 = arith.constant 0 : index
    %c0_0 = arith.constant 0 : index
    %c0_1 = arith.constant 0 : index
    %c0_2 = arith.constant 0 : index
    %1 = vector.load %arg7[%c0, %c0_0, %c0_1, %c0_2] : memref<2x10x10x64xf32, #tpu.memory_space<vmem>>, vector<2x1x10x64xf32>
    tpu.vector_store %arg7[%c0, %c0_0, %c0_1, %c0_2], %0 {strides = array<i32>} : memref<2x10x10x64xf32, #tpu.memory_space<vmem>>, vector<2x1x10x64xf32>,
    %cst_3 = arith.constant 0.000000e+00 : f32
    %2 = vector.broadcast %cst_3 : f32 to vector<2x1x10x64xf32>
    %c0_4 = arith.constant 0 : index
    %c9 = arith.constant 9 : index
    %c0_5 = arith.constant 0 : index
    %c0_6 = arith.constant 0 : index
    %3 = vector.load %arg7[%c0_4, %c9, %c0_5, %c0_6] : memref<2x10x10x64xf32, #tpu.memory_space<vmem>>, vector<2x1x10x64xf32>
    tpu.vector_store %arg7[%c0_4, %c9, %c0_5, %c0_6], %2 {strides = array<i32>} : memref<2x10x10x64xf32, #tpu.memory_space<vmem>>, vector<2x1x10x64xf32>,
    %cst_7 = arith.constant 0.000000e+00 : f32
    %4 = vector.broadcast %cst_7 : f32 to vector<2x8x1x64xf32>
    %c0_8 = arith.constant 0 : index
    %c1 = arith.constant 1 : index
    %c0_9 = arith.constant 0 : index
    %c0_10 = arith.constant 0 : index
    %5 = vector.load %arg7[%c0_8, %c1, %c0_9, %c0_10] : memref<2x10x10x64xf32, #tpu.memory_space<vmem>>, vector<2x8x1x64xf32>
    tpu.vector_store %arg7[%c0_8, %c1, %c0_9, %c0_10], %4 {strides = array<i32>} : memref<2x10x10x64xf32, #tpu.memory_space<vmem>>, vector<2x8x1x64xf32>,
    %cst_11 = arith.constant 0.000000e+00 : f32
    %6 = vector.broadcast %cst_11 : f32 to vector<2x8x1x64xf32>
    %c0_12 = arith.constant 0 : index
    %c1_13 = arith.constant 1 : index
    %c9_14 = arith.constant 9 : index
    %c0_15 = arith.constant 0 : index
    %7 = vector.load %arg7[%c0_12, %c1_13, %c9_14, %c0_15] : memref<2x10x10x64xf32, #tpu.memory_space<vmem>>, vector<2x8x1x64xf32>
    tpu.vector_store %arg7[%c0_12, %c1_13, %c9_14, %c0_15], %6 {strides = array<i32>} : memref<2x10x10x64xf32, #tpu.memory_space<vmem>>, vector<2x8x1x64xf32>,
    %cst_16 = arith.constant 0.000000e+00 : f32
    %8 = vector.broadcast %cst_16 : f32 to vector<2x1x10x8xf32>
    %c0_17 = arith.constant 0 : index
    %c0_18 = arith.constant 0 : index
    %c0_19 = arith.constant 0 : index
    %c0_20 = arith.constant 0 : index
    %9 = vector.load %arg8[%c0_17, %c0_18, %c0_19, %c0_20] : memref<2x10x10x8xf32, #tpu.memory_space<vmem>>, vector<2x1x10x8xf32>
    tpu.vector_store %arg8[%c0_17, %c0_18, %c0_19, %c0_20], %8 {strides = array<i32>} : memref<2x10x10x8xf32, #tpu.memory_space<vmem>>, vector<2x1x10x8xf32>,
    %cst_21 = arith.constant 0.000000e+00 : f32
    %10 = vector.broadcast %cst_21 : f32 to vector<2x1x10x8xf32>
    %c0_22 = arith.constant 0 : index
    %c9_23 = arith.constant 9 : index
    %c0_24 = arith.constant 0 : index
    %c0_25 = arith.constant 0 : index
    %11 = vector.load %arg8[%c0_22, %c9_23, %c0_24, %c0_25] : memref<2x10x10x8xf32, #tpu.memory_space<vmem>>, vector<2x1x10x8xf32>
    tpu.vector_store %arg8[%c0_22, %c9_23, %c0_24, %c0_25], %10 {strides = array<i32>} : memref<2x10x10x8xf32, #tpu.memory_space<vmem>>, vector<2x1x10x8xf32>,
    %cst_26 = arith.constant 0.000000e+00 : f32
    %12 = vector.broadcast %cst_26 : f32 to vector<2x8x1x8xf32>
    %c0_27 = arith.constant 0 : index
    %c1_28 = arith.constant 1 : index
    %c0_29 = arith.constant 0 : index
    %c0_30 = arith.constant 0 : index
    %13 = vector.load %arg8[%c0_27, %c1_28, %c0_29, %c0_30] : memref<2x10x10x8xf32, #tpu.memory_space<vmem>>, vector<2x8x1x8xf32>
    tpu.vector_store %arg8[%c0_27, %c1_28, %c0_29, %c0_30], %12 {strides = array<i32>} : memref<2x10x10x8xf32, #tpu.memory_space<vmem>>, vector<2x8x1x8xf32>,
    %cst_31 = arith.constant 0.000000e+00 : f32
    %14 = vector.broadcast %cst_31 : f32 to vector<2x8x1x8xf32>
    %c0_32 = arith.constant 0 : index
    %c1_33 = arith.constant 1 : index
    %c9_34 = arith.constant 9 : index
    %c0_35 = arith.constant 0 : index
    %15 = vector.load %arg8[%c0_32, %c1_33, %c9_34, %c0_35] : memref<2x10x10x8xf32, #tpu.memory_space<vmem>>, vector<2x8x1x8xf32>
    tpu.vector_store %arg8[%c0_32, %c1_33, %c9_34, %c0_35], %14 {strides = array<i32>} : memref<2x10x10x8xf32, #tpu.memory_space<vmem>>, vector<2x8x1x8xf32>,
    %c0_36 = arith.constant 0 : index
    %c0_37 = arith.constant 0 : index
    %c0_38 = arith.constant 0 : index
    %c0_39 = arith.constant 0 : index
    %16 = vector.load %arg1[%c0_36, %c0_37, %c0_38, %c0_39] : memref<2x8x8x64xf32, #tpu.memory_space<vmem>>, vector<2x8x8x64xf32>
    %c0_40 = arith.constant 0 : index
    %c1_41 = arith.constant 1 : index
    %c1_42 = arith.constant 1 : index
    %c0_43 = arith.constant 0 : index
    %17 = vector.load %arg7[%c0_40, %c1_41, %c1_42, %c0_43] : memref<2x10x10x64xf32, #tpu.memory_space<vmem>>, vector<2x8x8x64xf32>
    tpu.vector_store %arg7[%c0_40, %c1_41, %c1_42, %c0_43], %16 {strides = array<i32>} : memref<2x10x10x64xf32, #tpu.memory_space<vmem>>, vector<2x8x8x64xf32>,
    %cst_44 = arith.constant 0.000000e+00 : f32
    %18 = vector.broadcast %cst_44 : f32 to vector<128x8xf32>
    %c0_45 = arith.constant 0 : index
    %c0_46 = arith.constant 0 : index
    %c0_47 = arith.constant 0 : index
    %c0_48 = arith.constant 0 : index
    %19 = vector.load %arg7[%c0_45, %c0_46, %c0_47, %c0_48] : memref<2x10x10x64xf32, #tpu.memory_space<vmem>>, vector<2x8x8x64xf32>
    %20 = vector.shape_cast %19 : vector<2x8x8x64xf32> to vector<128x64xf32>
    %c0_49 = arith.constant 0 : index
    %c0_50 = arith.constant 0 : index
    %c0_51 = arith.constant 0 : index
    %21 = vector.load %arg2[%c0_49, %c0_50, %c0_51] : memref<9x64x8xf32, #tpu.memory_space<vmem>>, vector<1x64x8xf32>
    %22 = vector.shape_cast %21 : vector<1x64x8xf32> to vector<64x8xf32>
    %cst_52 = arith.constant dense<0.000000e+00> : vector<128x8xf32>
    %23 = tpu.matmul %20, %22, %cst_52 {dimension_numbers = #tpu.dot_dimension_numbers<[1], [0], [0], [1], [0, 0, 1, 1], [], []>} : vector<128x64xf32>, vector<64x8xf32>, vector<128x8xf32> -> vector<128x8xf32>
    %24 = arith.addf %18, %23 : vector<128x8xf32>
    %c0_53 = arith.constant 0 : index
    %c0_54 = arith.constant 0 : index
    %c1_55 = arith.constant 1 : index
    %c0_56 = arith.constant 0 : index
    %25 = vector.load %arg7[%c0_53, %c0_54, %c1_55, %c0_56] : memref<2x10x10x64xf32, #tpu.memory_space<vmem>>, vector<2x8x8x64xf32>
    %26 = vector.shape_cast %25 : vector<2x8x8x64xf32> to vector<128x64xf32>
    %c1_57 = arith.constant 1 : index
    %c0_58 = arith.constant 0 : index
    %c0_59 = arith.constant 0 : index
    %27 = vector.load %arg2[%c1_57, %c0_58, %c0_59] : memref<9x64x8xf32, #tpu.memory_space<vmem>>, vector<1x64x8xf32>
    %28 = vector.shape_cast %27 : vector<1x64x8xf32> to vector<64x8xf32>
    %cst_60 = arith.constant dense<0.000000e+00> : vector<128x8xf32>
    %29 = tpu.matmul %26, %28, %cst_60 {dimension_numbers = #tpu.dot_dimension_numbers<[1], [0], [0], [1], [0, 0, 1, 1], [], []>} : vector<128x64xf32>, vector<64x8xf32>, vector<128x8xf32> -> vector<128x8xf32>
    %30 = arith.addf %24, %29 : vector<128x8xf32>
    %c0_61 = arith.constant 0 : index
    %c0_62 = arith.constant 0 : index
    %c2 = arith.constant 2 : index
    %c0_63 = arith.constant 0 : index
    %31 = vector.load %arg7[%c0_61, %c0_62, %c2, %c0_63] : memref<2x10x10x64xf32, #tpu.memory_space<vmem>>, vector<2x8x8x64xf32>
    %32 = vector.shape_cast %31 : vector<2x8x8x64xf32> to vector<128x64xf32>
    %c2_64 = arith.constant 2 : index
    %c0_65 = arith.constant 0 : index
    %c0_66 = arith.constant 0 : index
    %33 = vector.load %arg2[%c2_64, %c0_65, %c0_66] : memref<9x64x8xf32, #tpu.memory_space<vmem>>, vector<1x64x8xf32>
    %34 = vector.shape_cast %33 : vector<1x64x8xf32> to vector<64x8xf32>
    %cst_67 = arith.constant dense<0.000000e+00> : vector<128x8xf32>
    %35 = tpu.matmul %32, %34, %cst_67 {dimension_numbers = #tpu.dot_dimension_numbers<[1], [0], [0], [1], [0, 0, 1, 1], [], []>} : vector<128x64xf32>, vector<64x8xf32>, vector<128x8xf32> -> vector<128x8xf32>
    %36 = arith.addf %30, %35 : vector<128x8xf32>
    %c0_68 = arith.constant 0 : index
    %c1_69 = arith.constant 1 : index
    %c0_70 = arith.constant 0 : index
    %c0_71 = arith.constant 0 : index
    %37 = vector.load %arg7[%c0_68, %c1_69, %c0_70, %c0_71] : memref<2x10x10x64xf32, #tpu.memory_space<vmem>>, vector<2x8x8x64xf32>
    %38 = vector.shape_cast %37 : vector<2x8x8x64xf32> to vector<128x64xf32>
    %c3 = arith.constant 3 : index
    %c0_72 = arith.constant 0 : index
    %c0_73 = arith.constant 0 : index
    %39 = vector.load %arg2[%c3, %c0_72, %c0_73] : memref<9x64x8xf32, #tpu.memory_space<vmem>>, vector<1x64x8xf32>
    %40 = vector.shape_cast %39 : vector<1x64x8xf32> to vector<64x8xf32>
    %cst_74 = arith.constant dense<0.000000e+00> : vector<128x8xf32>
    %41 = tpu.matmul %38, %40, %cst_74 {dimension_numbers = #tpu.dot_dimension_numbers<[1], [0], [0], [1], [0, 0, 1, 1], [], []>} : vector<128x64xf32>, vector<64x8xf32>, vector<128x8xf32> -> vector<128x8xf32>
    %42 = arith.addf %36, %41 : vector<128x8xf32>
    %c0_75 = arith.constant 0 : index
    %c1_76 = arith.constant 1 : index
    %c1_77 = arith.constant 1 : index
    %c0_78 = arith.constant 0 : index
    %43 = vector.load %arg7[%c0_75, %c1_76, %c1_77, %c0_78] : memref<2x10x10x64xf32, #tpu.memory_space<vmem>>, vector<2x8x8x64xf32>
    %44 = vector.shape_cast %43 : vector<2x8x8x64xf32> to vector<128x64xf32>
    %c4 = arith.constant 4 : index
    %c0_79 = arith.constant 0 : index
    %c0_80 = arith.constant 0 : index
    %45 = vector.load %arg2[%c4, %c0_79, %c0_80] : memref<9x64x8xf32, #tpu.memory_space<vmem>>, vector<1x64x8xf32>
    %46 = vector.shape_cast %45 : vector<1x64x8xf32> to vector<64x8xf32>
    %cst_81 = arith.constant dense<0.000000e+00> : vector<128x8xf32>
    %47 = tpu.matmul %44, %46, %cst_81 {dimension_numbers = #tpu.dot_dimension_numbers<[1], [0], [0], [1], [0, 0, 1, 1], [], []>} : vector<128x64xf32>, vector<64x8xf32>, vector<128x8xf32> -> vector<128x8xf32>
    %48 = arith.addf %42, %47 : vector<128x8xf32>
    %c0_82 = arith.constant 0 : index
    %c1_83 = arith.constant 1 : index
    %c2_84 = arith.constant 2 : index
    %c0_85 = arith.constant 0 : index
    %49 = vector.load %arg7[%c0_82, %c1_83, %c2_84, %c0_85] : memref<2x10x10x64xf32, #tpu.memory_space<vmem>>, vector<2x8x8x64xf32>
    %50 = vector.shape_cast %49 : vector<2x8x8x64xf32> to vector<128x64xf32>
    %c5 = arith.constant 5 : index
    %c0_86 = arith.constant 0 : index
    %c0_87 = arith.constant 0 : index
    %51 = vector.load %arg2[%c5, %c0_86, %c0_87] : memref<9x64x8xf32, #tpu.memory_space<vmem>>, vector<1x64x8xf32>
    %52 = vector.shape_cast %51 : vector<1x64x8xf32> to vector<64x8xf32>
    %cst_88 = arith.constant dense<0.000000e+00> : vector<128x8xf32>
    %53 = tpu.matmul %50, %52, %cst_88 {dimension_numbers = #tpu.dot_dimension_numbers<[1], [0], [0], [1], [0, 0, 1, 1], [], []>} : vector<128x64xf32>, vector<64x8xf32>, vector<128x8xf32> -> vector<128x8xf32>
    %54 = arith.addf %48, %53 : vector<128x8xf32>
    %c0_89 = arith.constant 0 : index
    %c2_90 = arith.constant 2 : index
    %c0_91 = arith.constant 0 : index
    %c0_92 = arith.constant 0 : index
    %55 = vector.load %arg7[%c0_89, %c2_90, %c0_91, %c0_92] : memref<2x10x10x64xf32, #tpu.memory_space<vmem>>, vector<2x8x8x64xf32>
    %56 = vector.shape_cast %55 : vector<2x8x8x64xf32> to vector<128x64xf32>
    %c6 = arith.constant 6 : index
    %c0_93 = arith.constant 0 : index
    %c0_94 = arith.constant 0 : index
    %57 = vector.load %arg2[%c6, %c0_93, %c0_94] : memref<9x64x8xf32, #tpu.memory_space<vmem>>, vector<1x64x8xf32>
    %58 = vector.shape_cast %57 : vector<1x64x8xf32> to vector<64x8xf32>
    %cst_95 = arith.constant dense<0.000000e+00> : vector<128x8xf32>
    %59 = tpu.matmul %56, %58, %cst_95 {dimension_numbers = #tpu.dot_dimension_numbers<[1], [0], [0], [1], [0, 0, 1, 1], [], []>} : vector<128x64xf32>, vector<64x8xf32>, vector<128x8xf32> -> vector<128x8xf32>
    %60 = arith.addf %54, %59 : vector<128x8xf32>
    %c0_96 = arith.constant 0 : index
    %c2_97 = arith.constant 2 : index
    %c1_98 = arith.constant 1 : index
    %c0_99 = arith.constant 0 : index
    %61 = vector.load %arg7[%c0_96, %c2_97, %c1_98, %c0_99] : memref<2x10x10x64xf32, #tpu.memory_space<vmem>>, vector<2x8x8x64xf32>
    %62 = vector.shape_cast %61 : vector<2x8x8x64xf32> to vector<128x64xf32>
    %c7 = arith.constant 7 : index
    %c0_100 = arith.constant 0 : index
    %c0_101 = arith.constant 0 : index
    %63 = vector.load %arg2[%c7, %c0_100, %c0_101] : memref<9x64x8xf32, #tpu.memory_space<vmem>>, vector<1x64x8xf32>
    %64 = vector.shape_cast %63 : vector<1x64x8xf32> to vector<64x8xf32>
    %cst_102 = arith.constant dense<0.000000e+00> : vector<128x8xf32>
    %65 = tpu.matmul %62, %64, %cst_102 {dimension_numbers = #tpu.dot_dimension_numbers<[1], [0], [0], [1], [0, 0, 1, 1], [], []>} : vector<128x64xf32>, vector<64x8xf32>, vector<128x8xf32> -> vector<128x8xf32>
    %66 = arith.addf %60, %65 : vector<128x8xf32>
    %c0_103 = arith.constant 0 : index
    %c2_104 = arith.constant 2 : index
    %c2_105 = arith.constant 2 : index
    %c0_106 = arith.constant 0 : index
    %67 = vector.load %arg7[%c0_103, %c2_104, %c2_105, %c0_106] : memref<2x10x10x64xf32, #tpu.memory_space<vmem>>, vector<2x8x8x64xf32>
    %68 = vector.shape_cast %67 : vector<2x8x8x64xf32> to vector<128x64xf32>
    %c8 = arith.constant 8 : index
    %c0_107 = arith.constant 0 : index
    %c0_108 = arith.constant 0 : index
    %69 = vector.load %arg2[%c8, %c0_107, %c0_108] : memref<9x64x8xf32, #tpu.memory_space<vmem>>, vector<1x64x8xf32>
    %70 = vector.shape_cast %69 : vector<1x64x8xf32> to vector<64x8xf32>
    %cst_109 = arith.constant dense<0.000000e+00> : vector<128x8xf32>
    %71 = tpu.matmul %68, %70, %cst_109 {dimension_numbers = #tpu.dot_dimension_numbers<[1], [0], [0], [1], [0, 0, 1, 1], [], []>} : vector<128x64xf32>, vector<64x8xf32>, vector<128x8xf32> -> vector<128x8xf32>
    %72 = arith.addf %66, %71 : vector<128x8xf32>
    %c0_110 = arith.constant 0 : index
    %c0_111 = arith.constant 0 : index
    %73 = vector.load %arg3[%c0_110, %c0_111] : memref<1x8xf32, #tpu.memory_space<vmem>>, vector<1x8xf32>
    %74 = vector.broadcast %73 : vector<1x8xf32> to vector<128x8xf32>
    %75 = arith.addf %72, %74 : vector<128x8xf32>
    %cst_112 = arith.constant 0.000000e+00 : f32
    %76 = vector.broadcast %cst_112 : f32 to vector<128x8xf32>
    %77 = arith.cmpf ogt, %75, %76 : vector<128x8xf32>
    %cst_113 = arith.constant 0.00999999977 : f32
    %78 = vector.broadcast %cst_113 : f32 to vector<128x8xf32>
    %79 = arith.mulf %78, %75 : vector<128x8xf32>
    %80 = arith.select %77, %75, %79 : vector<128x8xi1>, vector<128x8xf32>
    %81 = vector.shape_cast %80 : vector<128x8xf32> to vector<2x8x8x8xf32>
    %c0_114 = arith.constant 0 : index
    %c1_115 = arith.constant 1 : index
    %c1_116 = arith.constant 1 : index
    %c0_117 = arith.constant 0 : index
    %82 = vector.load %arg8[%c0_114, %c1_115, %c1_116, %c0_117] : memref<2x10x10x8xf32, #tpu.memory_space<vmem>>, vector<2x8x8x8xf32>
    tpu.vector_store %arg8[%c0_114, %c1_115, %c1_116, %c0_117], %81 {strides = array<i32>} : memref<2x10x10x8xf32, #tpu.memory_space<vmem>>, vector<2x8x8x8xf32>,
    %cst_118 = arith.constant 0.000000e+00 : f32
    %83 = vector.broadcast %cst_118 : f32 to vector<128x64xf32>
    %c0_119 = arith.constant 0 : index
    %c0_120 = arith.constant 0 : index
    %c0_121 = arith.constant 0 : index
    %c0_122 = arith.constant 0 : index
    %84 = vector.load %arg8[%c0_119, %c0_120, %c0_121, %c0_122] : memref<2x10x10x8xf32, #tpu.memory_space<vmem>>, vector<2x8x8x8xf32>
    %85 = vector.shape_cast %84 : vector<2x8x8x8xf32> to vector<128x8xf32>
    %c0_123 = arith.constant 0 : index
    %c0_124 = arith.constant 0 : index
    %c0_125 = arith.constant 0 : index
    %86 = vector.load %arg4[%c0_123, %c0_124, %c0_125] : memref<9x8x64xf32, #tpu.memory_space<vmem>>, vector<1x8x64xf32>
    %87 = vector.shape_cast %86 : vector<1x8x64xf32> to vector<8x64xf32>
    %cst_126 = arith.constant dense<0.000000e+00> : vector<128x64xf32>
    %88 = tpu.matmul %85, %87, %cst_126 {dimension_numbers = #tpu.dot_dimension_numbers<[1], [0], [0], [1], [0, 0, 1, 1], [], []>} : vector<128x8xf32>, vector<8x64xf32>, vector<128x64xf32> -> vector<128x64xf32>
    %89 = arith.addf %83, %88 : vector<128x64xf32>
    %c0_127 = arith.constant 0 : index
    %c0_128 = arith.constant 0 : index
    %c1_129 = arith.constant 1 : index
    %c0_130 = arith.constant 0 : index
    %90 = vector.load %arg8[%c0_127, %c0_128, %c1_129, %c0_130] : memref<2x10x10x8xf32, #tpu.memory_space<vmem>>, vector<2x8x8x8xf32>
    %91 = vector.shape_cast %90 : vector<2x8x8x8xf32> to vector<128x8xf32>
    %c1_131 = arith.constant 1 : index
    %c0_132 = arith.constant 0 : index
    %c0_133 = arith.constant 0 : index
    %92 = vector.load %arg4[%c1_131, %c0_132, %c0_133] : memref<9x8x64xf32, #tpu.memory_space<vmem>>, vector<1x8x64xf32>
    %93 = vector.shape_cast %92 : vector<1x8x64xf32> to vector<8x64xf32>
    %cst_134 = arith.constant dense<0.000000e+00> : vector<128x64xf32>
    %94 = tpu.matmul %91, %93, %cst_134 {dimension_numbers = #tpu.dot_dimension_numbers<[1], [0], [0], [1], [0, 0, 1, 1], [], []>} : vector<128x8xf32>, vector<8x64xf32>, vector<128x64xf32> -> vector<128x64xf32>
    %95 = arith.addf %89, %94 : vector<128x64xf32>
    %c0_135 = arith.constant 0 : index
    %c0_136 = arith.constant 0 : index
    %c2_137 = arith.constant 2 : index
    %c0_138 = arith.constant 0 : index
    %96 = vector.load %arg8[%c0_135, %c0_136, %c2_137, %c0_138] : memref<2x10x10x8xf32, #tpu.memory_space<vmem>>, vector<2x8x8x8xf32>
    %97 = vector.shape_cast %96 : vector<2x8x8x8xf32> to vector<128x8xf32>
    %c2_139 = arith.constant 2 : index
    %c0_140 = arith.constant 0 : index
    %c0_141 = arith.constant 0 : index
    %98 = vector.load %arg4[%c2_139, %c0_140, %c0_141] : memref<9x8x64xf32, #tpu.memory_space<vmem>>, vector<1x8x64xf32>
    %99 = vector.shape_cast %98 : vector<1x8x64xf32> to vector<8x64xf32>
    %cst_142 = arith.constant dense<0.000000e+00> : vector<128x64xf32>
    %100 = tpu.matmul %97, %99, %cst_142 {dimension_numbers = #tpu.dot_dimension_numbers<[1], [0], [0], [1], [0, 0, 1, 1], [], []>} : vector<128x8xf32>, vector<8x64xf32>, vector<128x64xf32> -> vector<128x64xf32>
    %101 = arith.addf %95, %100 : vector<128x64xf32>
    %c0_143 = arith.constant 0 : index
    %c1_144 = arith.constant 1 : index
    %c0_145 = arith.constant 0 : index
    %c0_146 = arith.constant 0 : index
    %102 = vector.load %arg8[%c0_143, %c1_144, %c0_145, %c0_146] : memref<2x10x10x8xf32, #tpu.memory_space<vmem>>, vector<2x8x8x8xf32>
    %103 = vector.shape_cast %102 : vector<2x8x8x8xf32> to vector<128x8xf32>
    %c3_147 = arith.constant 3 : index
    %c0_148 = arith.constant 0 : index
    %c0_149 = arith.constant 0 : index
    %104 = vector.load %arg4[%c3_147, %c0_148, %c0_149] : memref<9x8x64xf32, #tpu.memory_space<vmem>>, vector<1x8x64xf32>
    %105 = vector.shape_cast %104 : vector<1x8x64xf32> to vector<8x64xf32>
    %cst_150 = arith.constant dense<0.000000e+00> : vector<128x64xf32>
    %106 = tpu.matmul %103, %105, %cst_150 {dimension_numbers = #tpu.dot_dimension_numbers<[1], [0], [0], [1], [0, 0, 1, 1], [], []>} : vector<128x8xf32>, vector<8x64xf32>, vector<128x64xf32> -> vector<128x64xf32>
    %107 = arith.addf %101, %106 : vector<128x64xf32>
    %c0_151 = arith.constant 0 : index
    %c1_152 = arith.constant 1 : index
    %c1_153 = arith.constant 1 : index
    %c0_154 = arith.constant 0 : index
    %108 = vector.load %arg8[%c0_151, %c1_152, %c1_153, %c0_154] : memref<2x10x10x8xf32, #tpu.memory_space<vmem>>, vector<2x8x8x8xf32>
    %109 = vector.shape_cast %108 : vector<2x8x8x8xf32> to vector<128x8xf32>
    %c4_155 = arith.constant 4 : index
    %c0_156 = arith.constant 0 : index
    %c0_157 = arith.constant 0 : index
    %110 = vector.load %arg4[%c4_155, %c0_156, %c0_157] : memref<9x8x64xf32, #tpu.memory_space<vmem>>, vector<1x8x64xf32>
    %111 = vector.shape_cast %110 : vector<1x8x64xf32> to vector<8x64xf32>
    %cst_158 = arith.constant dense<0.000000e+00> : vector<128x64xf32>
    %112 = tpu.matmul %109, %111, %cst_158 {dimension_numbers = #tpu.dot_dimension_numbers<[1], [0], [0], [1], [0, 0, 1, 1], [], []>} : vector<128x8xf32>, vector<8x64xf32>, vector<128x64xf32> -> vector<128x64xf32>
    %113 = arith.addf %107, %112 : vector<128x64xf32>
    %c0_159 = arith.constant 0 : index
    %c1_160 = arith.constant 1 : index
    %c2_161 = arith.constant 2 : index
    %c0_162 = arith.constant 0 : index
    %114 = vector.load %arg8[%c0_159, %c1_160, %c2_161, %c0_162] : memref<2x10x10x8xf32, #tpu.memory_space<vmem>>, vector<2x8x8x8xf32>
    %115 = vector.shape_cast %114 : vector<2x8x8x8xf32> to vector<128x8xf32>
    %c5_163 = arith.constant 5 : index
    %c0_164 = arith.constant 0 : index
    %c0_165 = arith.constant 0 : index
    %116 = vector.load %arg4[%c5_163, %c0_164, %c0_165] : memref<9x8x64xf32, #tpu.memory_space<vmem>>, vector<1x8x64xf32>
    %117 = vector.shape_cast %116 : vector<1x8x64xf32> to vector<8x64xf32>
    %cst_166 = arith.constant dense<0.000000e+00> : vector<128x64xf32>
    %118 = tpu.matmul %115, %117, %cst_166 {dimension_numbers = #tpu.dot_dimension_numbers<[1], [0], [0], [1], [0, 0, 1, 1], [], []>} : vector<128x8xf32>, vector<8x64xf32>, vector<128x64xf32> -> vector<128x64xf32>
    %119 = arith.addf %113, %118 : vector<128x64xf32>
    %c0_167 = arith.constant 0 : index
    %c2_168 = arith.constant 2 : index
    %c0_169 = arith.constant 0 : index
    %c0_170 = arith.constant 0 : index
    %120 = vector.load %arg8[%c0_167, %c2_168, %c0_169, %c0_170] : memref<2x10x10x8xf32, #tpu.memory_space<vmem>>, vector<2x8x8x8xf32>
    %121 = vector.shape_cast %120 : vector<2x8x8x8xf32> to vector<128x8xf32>
    %c6_171 = arith.constant 6 : index
    %c0_172 = arith.constant 0 : index
    %c0_173 = arith.constant 0 : index
    %122 = vector.load %arg4[%c6_171, %c0_172, %c0_173] : memref<9x8x64xf32, #tpu.memory_space<vmem>>, vector<1x8x64xf32>
    %123 = vector.shape_cast %122 : vector<1x8x64xf32> to vector<8x64xf32>
    %cst_174 = arith.constant dense<0.000000e+00> : vector<128x64xf32>
    %124 = tpu.matmul %121, %123, %cst_174 {dimension_numbers = #tpu.dot_dimension_numbers<[1], [0], [0], [1], [0, 0, 1, 1], [], []>} : vector<128x8xf32>, vector<8x64xf32>, vector<128x64xf32> -> vector<128x64xf32>
    %125 = arith.addf %119, %124 : vector<128x64xf32>
    %c0_175 = arith.constant 0 : index
    %c2_176 = arith.constant 2 : index
    %c1_177 = arith.constant 1 : index
    %c0_178 = arith.constant 0 : index
    %126 = vector.load %arg8[%c0_175, %c2_176, %c1_177, %c0_178] : memref<2x10x10x8xf32, #tpu.memory_space<vmem>>, vector<2x8x8x8xf32>
    %127 = vector.shape_cast %126 : vector<2x8x8x8xf32> to vector<128x8xf32>
    %c7_179 = arith.constant 7 : index
    %c0_180 = arith.constant 0 : index
    %c0_181 = arith.constant 0 : index
    %128 = vector.load %arg4[%c7_179, %c0_180, %c0_181] : memref<9x8x64xf32, #tpu.memory_space<vmem>>, vector<1x8x64xf32>
    %129 = vector.shape_cast %128 : vector<1x8x64xf32> to vector<8x64xf32>
    %cst_182 = arith.constant dense<0.000000e+00> : vector<128x64xf32>
    %130 = tpu.matmul %127, %129, %cst_182 {dimension_numbers = #tpu.dot_dimension_numbers<[1], [0], [0], [1], [0, 0, 1, 1], [], []>} : vector<128x8xf32>, vector<8x64xf32>, vector<128x64xf32> -> vector<128x64xf32>
    %131 = arith.addf %125, %130 : vector<128x64xf32>
    %c0_183 = arith.constant 0 : index
    %c2_184 = arith.constant 2 : index
    %c2_185 = arith.constant 2 : index
    %c0_186 = arith.constant 0 : index
    %132 = vector.load %arg8[%c0_183, %c2_184, %c2_185, %c0_186] : memref<2x10x10x8xf32, #tpu.memory_space<vmem>>, vector<2x8x8x8xf32>
    %133 = vector.shape_cast %132 : vector<2x8x8x8xf32> to vector<128x8xf32>
    %c8_187 = arith.constant 8 : index
    %c0_188 = arith.constant 0 : index
    %c0_189 = arith.constant 0 : index
    %134 = vector.load %arg4[%c8_187, %c0_188, %c0_189] : memref<9x8x64xf32, #tpu.memory_space<vmem>>, vector<1x8x64xf32>
    %135 = vector.shape_cast %134 : vector<1x8x64xf32> to vector<8x64xf32>
    %cst_190 = arith.constant dense<0.000000e+00> : vector<128x64xf32>
    %136 = tpu.matmul %133, %135, %cst_190 {dimension_numbers = #tpu.dot_dimension_numbers<[1], [0], [0], [1], [0, 0, 1, 1], [], []>} : vector<128x8xf32>, vector<8x64xf32>, vector<128x64xf32> -> vector<128x64xf32>
    %137 = arith.addf %131, %136 : vector<128x64xf32>
    %c0_191 = arith.constant 0 : index
    %c0_192 = arith.constant 0 : index
    %138 = vector.load %arg5[%c0_191, %c0_192] : memref<1x64xf32, #tpu.memory_space<vmem>>, vector<1x64xf32>
    %139 = vector.broadcast %138 : vector<1x64xf32> to vector<128x64xf32>
    %140 = arith.addf %137, %139 : vector<128x64xf32>
    %cst_193 = arith.constant 0.000000e+00 : f32
    %141 = vector.broadcast %cst_193 : f32 to vector<128x64xf32>
    %142 = arith.maximumf %140, %141 : vector<128x64xf32>
    %143 = vector.shape_cast %142 : vector<128x64xf32> to vector<2x64x64xf32>
    %cst_194 = arith.constant dense<0.000000e+00> : vector<2x64xf32>
    %144 = vector.multi_reduction <add>, %143, %cst_194 [1] : vector<2x64x64xf32> to vector<2x64xf32>
    %cst_195 = arith.constant 6.400000e+01 : f32
    %145 = vector.broadcast %cst_195 : f32 to vector<2x64xf32>
    %146 = arith.divf %144, %145 : vector<2x64xf32>
    %cst_196 = arith.constant dense<0xFF800000> : vector<2xf32>
    %147 = vector.multi_reduction <maximumf>, %146, %cst_196 [1] : vector<2x64xf32> to vector<2xf32>
    %148 = vector.shape_cast %147 : vector<2xf32> to vector<2x1xf32>
    %149 = vector.broadcast %148 : vector<2x1xf32> to vector<2x64xf32>
    %150 = arith.subf %146, %149 : vector<2x64xf32>
    %151 = math.exp %150 : vector<2x64xf32>
    %cst_197 = arith.constant dense<0.000000e+00> : vector<2xf32>
    %152 = vector.multi_reduction <add>, %151, %cst_197 [1] : vector<2x64xf32> to vector<2xf32>
    %153 = vector.shape_cast %152 : vector<2xf32> to vector<2x1xf32>
    %154 = tpu.reciprocal %153 : vector<2x1xf32> -> vector<2x1xf32>
    %155 = vector.broadcast %154 : vector<2x1xf32> to vector<2x64xf32>
    %156 = arith.mulf %151, %155 : vector<2x64xf32>
    %c0_198 = arith.constant 0 : index
    %c0_199 = arith.constant 0 : index
    %157 = vector.load %arg6[%c0_198, %c0_199] : memref<2x64xf32, #tpu.memory_space<vmem>>, vector<2x64xf32>
    tpu.vector_store %arg6[%c0_198, %c0_199], %156 {strides = array<i32>} : memref<2x64xf32, #tpu.memory_space<vmem>>, vector<2x64xf32>,
    return
  }
  func.func @transform_0(%arg0: i32) -> (i32, i32, i32, i32) {
    %c0_i32 = arith.constant 0 : i32
    %c0_i32_0 = arith.constant 0 : i32
    %c0_i32_1 = arith.constant 0 : i32
    %c0_i32_2 = arith.constant 0 : i32
    return %arg0, %c0_i32, %c0_i32_0, %c0_i32_1 : i32, i32, i32, i32
  }
  func.func @transform_1(%arg0: i32) -> (i32, i32, i32) {
    %c0_i32 = arith.constant 0 : i32
    %c0_i32_0 = arith.constant 0 : i32
    %c0_i32_1 = arith.constant 0 : i32
    %c0_i32_2 = arith.constant 0 : i32
    return %c0_i32, %c0_i32_0, %c0_i32_1 : i32, i32, i32
  }
  func.func @transform_2(%arg0: i32) -> (i32, i32) {
    %c0_i32 = arith.constant 0 : i32
    %c0_i32_0 = arith.constant 0 : i32
    %c0_i32_1 = arith.constant 0 : i32
    return %c0_i32, %c0_i32_0 : i32, i32
  }
  func.func @transform_3(%arg0: i32) -> (i32, i32, i32) {
    %c0_i32 = arith.constant 0 : i32
    %c0_i32_0 = arith.constant 0 : i32
    %c0_i32_1 = arith.constant 0 : i32
    %c0_i32_2 = arith.constant 0 : i32
    return %c0_i32, %c0_i32_0, %c0_i32_1 : i32, i32, i32
  }
  func.func @transform_4(%arg0: i32) -> (i32, i32) {
    %c0_i32 = arith.constant 0 : i32
    %c0_i32_0 = arith.constant 0 : i32
    %c0_i32_1 = arith.constant 0 : i32
    return %c0_i32, %c0_i32_0 : i32, i32
  }
  func.func @transform_5(%arg0: i32) -> (i32, i32) {
    %c0_i32 = arith.constant 0 : i32
    %c0_i32_0 = arith.constant 0 : i32
    return %arg0, %c0_i32 : i32, i32
  }
}

</mosaic_0001>

<bundles_post_ra>
// kernel: se_block_forward.1
= control target key start
LH: loop header
LB: loop body
LE: loop exit
PB: predicated region body
PF: predicated region fallthrough
CT: control target
= control target key end

     0   :  { %vm21_vm0 = vcmask 523264   ;;  %vm23_vm1 = vcmask 517120   ;;  %v6209_v5 = vmov 0.0   ;;  %vm33_vm2 = vcmask 516096   ;;  %s7516_s0 = inlined_call_operand.vmem [shape: f32[2,8,8,64], index: 0, kind: input, shape index: {}]   ;;  %s7517_s1 = inlined_call_operand.vmem [shape: f32[9,64,8], index: 1, kind: input, shape index: {}]   ;;  %s7518_s2 = inlined_call_operand.vmem [shape: f32[1,8], index: 2, kind: input, shape index: {}]   ;;  %s7519_s3 = inlined_call_operand.vmem [shape: f32[9,8,64], index: 3, kind: input, shape index: {}]   ;;  %s7520_s4 = inlined_call_operand.vmem [shape: f32[1,64], index: 4, kind: input, shape index: {}]   ;;  %s7521_s5 = inlined_call_operand.hbm [shape: f32[2,64], index: 5, kind: output, shape index: {}]  }
   0x1   :  { %v4452_v0 = vld [vmem:[%s7517_s1 + $0x40] sm:$0xff]  ;;  %v4453_v1 = vld [vmem:[%s7517_s1 + $0x48] sm:$0xff]  ;;  %v4454_v2 = vld [vmem:[%s7517_s1 + $0x50] sm:$0xff]  ;;  %22 = vst.msk [vmem:[#allocation2] sm:$0xff] %vm21_vm0, %v6209_v5 }
   0x2   :  { %v5777_v3 = vpack.c.bf16 %v4453_v1, %v4452_v0  ;;  %v4455_v4 = vld [vmem:[%s7517_s1 + $0x58] sm:$0xff]  ;;  %24 = vst.msk [vmem:[#allocation2 + $0x8] sm:$0x3] %vm23_vm1, %v6209_v5  ;;  %26 = vst.msk [vmem:[#allocation2 + $0xa8] sm:$0x3] %vm23_vm1, %v6209_v5  ;;  %v4456_v7 = vld [vmem:[%s7517_s1 + $0x60] sm:$0xff] }
   0x3   :  { %25 = vst.msk [vmem:[#allocation2 + $0xa0] sm:$0xff] %vm21_vm0, %v6209_v5  ;;  %28 = vst.msk [vmem:[#allocation2 + $0x90] sm:$0xff] %vm21_vm0, %v6209_v5  ;;  %v5781_v6 = vpack.c.bf16 %v4455_v4, %v4454_v2  ;;  %v4457_v8 = vld [vmem:[%s7517_s1 + $0x68] sm:$0xff]  ;;  %v111_v9 = vld [vmem:[%s7516_s0] sm:$0xff] }
   0x4   :  { %29 = vst.msk [vmem:[#allocation2 + $0x98] sm:$0x3] %vm23_vm1, %v6209_v5  ;;  %31 = vst.msk [vmem:[#allocation2 + $0x138] sm:$0x3] %vm23_vm1, %v6209_v5  ;;  %5778 = vmatprep.subr.bf16.mxu0 %v5777_v3  ;;  %v112_v10 = vld [vmem:[%s7516_s0 + $0x8] sm:$0xff]  ;;  %v113_v11 = vld [vmem:[%s7516_s0 + $0x10] sm:$0xff]  ;;  %v5785_v14 = vpack.c.bf16 %v4457_v8, %v4456_v7 }
   0x5   :  { %30 = vst.msk [vmem:[#allocation2 + $0x130] sm:$0xff] %vm21_vm0, %v6209_v5  ;;  %127 = vst.msk [vmem:[#allocation2 + $0x11] sm:$0xff] %vm21_vm0, %v111_v9  ;;  %5780 = vmatpush3.bf16.msra.mxu0 %v5777_v3  ;;  %v114_v12 = vld [vmem:[%s7516_s0 + $0x18] sm:$0xff]  ;;  %v115_v13 = vld [vmem:[%s7516_s0 + $0x20] sm:$0xff] }
   0x6   :  { %34 = vst.msk [vmem:[#allocation2 + $0x10] sm:$0x1] %vm33_vm2, %v6209_v5  ;;  %35 = vst.msk [vmem:[#allocation2 + $0x20] sm:$0x1] %vm33_vm2, %v6209_v5  ;;  %5782 = vmatprep.subr.bf16.mxu0 %v5781_v6  ;;  %v4458_v15 = vld [vmem:[%s7517_s1 + $0x70] sm:$0xff]  ;;  %v116_v16 = vld [vmem:[%s7516_s0 + $0x28] sm:$0xff] }
   0x7   :  { %36 = vst.msk [vmem:[#allocation2 + $0x30] sm:$0x1] %vm33_vm2, %v6209_v5  ;;  %37 = vst.msk [vmem:[#allocation2 + $0x40] sm:$0x1] %vm33_vm2, %v6209_v5  ;;  %v4459_v17 = vld [vmem:[%s7517_s1 + $0x78] sm:$0xff]  ;;  %v117_v18 = vld [vmem:[%s7516_s0 + $0x30] sm:$0xff] }
   0x8   :  { %38 = vst.msk [vmem:[#allocation2 + $0x50] sm:$0x1] %vm33_vm2, %v6209_v5  ;;  %39 = vst.msk [vmem:[#allocation2 + $0x60] sm:$0x1] %vm33_vm2, %v6209_v5  ;;  %v119_v19 = vld [vmem:[%s7516_s0 + $0x40] sm:$0xff]  ;;  %v120_v20 = vld [vmem:[%s7516_s0 + $0x48] sm:$0xff]  ;;  %v5789_v24 = vpack.c.bf16 %v4459_v17, %v4458_v15 }
   0x9   :  { %40 = vst.msk [vmem:[#allocation2 + $0x70] sm:$0x1] %vm33_vm2, %v6209_v5  ;;  %41 = vst.msk [vmem:[#allocation2 + $0x80] sm:$0x1] %vm33_vm2, %v6209_v5  ;;  %v121_v21 = vld [vmem:[%s7516_s0 + $0x50] sm:$0xff]  ;;  %5784 = vmatpush3.bf16.msra.mxu0 %v5781_v6  ;;  %v167_v22 = vld [vmem:[#allocation2 + $0x1] sm:$0xff] }
   0xa   :  { %42 = vst.msk [vmem:[#allocation2 + $0xb0] sm:$0x1] %vm33_vm2, %v6209_v5  ;;  %43 = vst.msk [vmem:[#allocation2 + $0xc0] sm:$0x1] %vm33_vm2, %v6209_v5  ;;  %v122_v23 = vld [vmem:[%s7516_s0 + $0x58] sm:$0xff]  ;;  %5786 = vmatprep.subr.bf16.mxu0 %v5785_v14  ;;  %5199 = vmatprep.mubr.msk.f32.mxu0 %vm21_vm0, %v167_v22  ;;  %v159_v25 = vld [vmem:[%s7517_s1] sm:$0xff] }
   0xb   :  { %44 = vst.msk [vmem:[#allocation2 + $0xd0] sm:$0x1] %vm33_vm2, %v6209_v5  ;;  %45 = vst.msk [vmem:[#allocation2 + $0xe0] sm:$0x1] %vm33_vm2, %v6209_v5  ;;  %v123_v26 = vld [vmem:[%s7516_s0 + $0x60] sm:$0xff]  ;;  %v160_v27 = vld [vmem:[%s7517_s1 + $0x8] sm:$0xff] }
   0xc   :  { %46 = vst.msk [vmem:[#allocation2 + $0xf0] sm:$0x1] %vm33_vm2, %v6209_v5  ;;  %47 = vst.msk [vmem:[#allocation2 + $0x100] sm:$0x1] %vm33_vm2, %v6209_v5  ;;  %v124_v28 = vld [vmem:[%s7516_s0 + $0x68] sm:$0xff]  ;;  %v125_v29 = vld [vmem:[%s7516_s0 + $0x70] sm:$0xff]  ;;  %v5793_v30 = vpack.c.bf16 %v160_v27, %v159_v25 }
   0xd   :  { %48 = vst.msk [vmem:[#allocation2 + $0x110] sm:$0x1] %vm33_vm2, %v6209_v5  ;;  %49 = vst.msk [vmem:[#allocation2 + $0x120] sm:$0x1] %vm33_vm2, %v6209_v5  ;;  %5788 = vmatpush3.bf16.msra.mxu0 %v5785_v14  ;;  %v161_v31 = vld [vmem:[%s7517_s1 + $0x10] sm:$0xff]  ;;  %v162_v32 = vld [vmem:[%s7517_s1 + $0x18] sm:$0xff] }
   0xe   :  { %50 = vst.msk [vmem:[#allocation2 + $0x19] sm:$0x1] %vm33_vm2, %v6209_v5  ;;  %51 = vst.msk [vmem:[#allocation2 + $0x29] sm:$0x1] %vm33_vm2, %v6209_v5  ;;  %5790 = vmatprep.subr.bf16.mxu0 %v5789_v24  ;;  %v6414_v33 = vld [vmem:[#allocation2 + $0x11] sm:$0xff]  ;;  %v5797_v35 = vpack.c.bf16 %v162_v32, %v161_v31  ;;  %v163_v36 = vld [vmem:[%s7517_s1 + $0x20] sm:$0xff] }
   0xf   :  { %52 = vst.msk [vmem:[#allocation2 + $0x39] sm:$0x1] %vm33_vm2, %v6209_v5  ;;  %53 = vst.msk [vmem:[#allocation2 + $0x49] sm:$0x1] %vm33_vm2, %v6209_v5  ;;  %v164_v37 = vld [vmem:[%s7517_s1 + $0x28] sm:$0xff]  ;;  %v165_v41 = vld [vmem:[%s7517_s1 + $0x30] sm:$0xff] }
  0x10   :  { %54 = vst.msk [vmem:[#allocation2 + $0x59] sm:$0x1] %vm33_vm2, %v6209_v5  ;;  %55 = vst.msk [vmem:[#allocation2 + $0x69] sm:$0x1] %vm33_vm2, %v6209_v5  ;;  %v5801_v40 = vpack.c.bf16 %v164_v37, %v163_v36  ;;  %v166_v42 = vld [vmem:[%s7517_s1 + $0x38] sm:$0xff]  ;;  %v4492_v46 = vld [vmem:[%s7517_s1 + $0x80] sm:$0xff] }
  0x11   :  { %56 = vst.msk [vmem:[#allocation2 + $0x79] sm:$0x1] %vm33_vm2, %v6209_v5  ;;  %57 = vst.msk [vmem:[#allocation2 + $0x89] sm:$0x1] %vm33_vm2, %v6209_v5  ;;  %5792 = vmatpush3.bf16.msra.mxu0 %v5789_v24  ;;  %v5805_v45 = vpack.c.bf16 %v166_v42, %v165_v41  ;;  %v4493_v47 = vld [vmem:[%s7517_s1 + $0x88] sm:$0xff]  ;;  %v118_v52 = vld [vmem:[%s7516_s0 + $0x38] sm:$0xff] }
  0x12   :  { %58 = vst.msk [vmem:[#allocation2 + $0xb9] sm:$0x1] %vm33_vm2, %v6209_v5  ;;  %59 = vst.msk [vmem:[#allocation2 + $0xc9] sm:$0x1] %vm33_vm2, %v6209_v5  ;;  %5794 = vmatprep.subr.bf16.mxu0 %v5793_v30  ;;  %v175_v49 = vld [vmem:[#allocation2 + $0xa1] sm:$0xff]  ;;  %v5809_v50 = vpack.c.bf16 %v4493_v47, %v4492_v46  ;;  %v126_v54 = vld [vmem:[%s7516_s0 + $0x78] sm:$0xff] }
  0x13   :  { %60 = vst.msk [vmem:[#allocation2 + $0xd9] sm:$0x1] %vm33_vm2, %v6209_v5  ;;  %61 = vst.msk [vmem:[#allocation2 + $0xe9] sm:$0x1] %vm33_vm2, %v6209_v5 }
  0x14   :  { %62 = vst.msk [vmem:[#allocation2 + $0xf9] sm:$0x1] %vm33_vm2, %v6209_v5  ;;  %63 = vst.msk [vmem:[#allocation2 + $0x109] sm:$0x1] %vm33_vm2, %v6209_v5  ;;  %5200 = vmatmul.mubr.msk.f32.vlgmr.msra.gmra.mrb[0].mxu0 %vm21_vm0, %v6414_v33 }
  0x15   :  { %64 = vst.msk [vmem:[#allocation2 + $0x119] sm:$0x1] %vm33_vm2, %v6209_v5  ;;  %65 = vst.msk [vmem:[#allocation2 + $0x129] sm:$0x1] %vm33_vm2, %v6209_v5  ;;  %5796 = vmatpush3.bf16.msra.mxu0 %v5793_v30 }
  0x16   :  { %128 = vst.msk [vmem:[#allocation2 + $0x21] sm:$0xff] %vm21_vm0, %v112_v10  ;;  %129 = vst.msk [vmem:[#allocation2 + $0x31] sm:$0xff] %vm21_vm0, %v113_v11  ;;  %5798 = vmatprep.subr.bf16.mxu0 %v5797_v35 }
  0x17   :  { %130 = vst.msk [vmem:[#allocation2 + $0x41] sm:$0xff] %vm21_vm0, %v114_v12  ;;  %131 = vst.msk [vmem:[#allocation2 + $0x51] sm:$0xff] %vm21_vm0, %v115_v13 }
  0x18   :  { %132 = vst.msk [vmem:[#allocation2 + $0x61] sm:$0xff] %vm21_vm0, %v116_v16  ;;  %133 = vst.msk [vmem:[#allocation2 + $0x71] sm:$0xff] %vm21_vm0, %v117_v18 }
  0x19   :  { %135 = vst.msk [vmem:[#allocation2 + $0xb1] sm:$0xff] %vm21_vm0, %v119_v19  ;;  %136 = vst.msk [vmem:[#allocation2 + $0xc1] sm:$0xff] %vm21_vm0, %v120_v20  ;;  %5800 = vmatpush3.bf16.msra.mxu0 %v5797_v35 }
  0x1a   :  { %137 = vst.msk [vmem:[#allocation2 + $0xd1] sm:$0xff] %vm21_vm0, %v121_v21  ;;  %138 = vst.msk [vmem:[#allocation2 + $0xe1] sm:$0xff] %vm21_vm0, %v122_v23  ;;  %5802 = vmatprep.subr.bf16.mxu0 %v5801_v40 }
  0x1b   :  { %139 = vst.msk [vmem:[#allocation2 + $0xf1] sm:$0xff] %vm21_vm0, %v123_v26  ;;  %140 = vst.msk [vmem:[#allocation2 + $0x101] sm:$0xff] %vm21_vm0, %v124_v28 }
  0x1c   :  { %141 = vst.msk [vmem:[#allocation2 + $0x111] sm:$0xff] %vm21_vm0, %v125_v29  ;;  %134 = vst.msk [vmem:[#allocation2 + $0x81] sm:$0xff] %vm21_vm0, %v118_v52 }
  0x1d   :  { %v6416_v34 = vld [vmem:[#allocation2 + $0x21] sm:$0xff]  ;;  %v6428_v38 = vld [vmem:[#allocation2 + $0x31] sm:$0xff]  ;;  %5804 = vmatpush3.bf16.msra.mxu0 %v5801_v40  ;;  %142 = vst.msk [vmem:[#allocation2 + $0x121] sm:$0xff] %vm21_vm0, %v126_v54 }
  0x1e   :  { %5202 = vmatprep.mubr.msk.f32.mxu0 %vm21_vm0, %v6416_v34  ;;  %v6430_v39 = vld [vmem:[#allocation2 + $0x41] sm:$0xff]  ;;  %v6442_v43 = vld [vmem:[#allocation2 + $0x51] sm:$0xff]  ;;  %5806 = vmatprep.subr.bf16.mxu0 %v5805_v45 }
  0x1f   :  { %5203 = vmatmul.mubr.msk.f32.gmra.mrb[2].mxu0 %vm21_vm0, %v6428_v38  ;;  %v6444_v44 = vld [vmem:[#allocation2 + $0x61] sm:$0xff]  ;;  %v6456_v48 = vld [vmem:[#allocation2 + $0x71] sm:$0xff] }
  0x20   :  { %5205 = vmatprep.mubr.msk.f32.mxu0 %vm21_vm0, %v6430_v39  ;;  %v6461_v51 = vld [vmem:[#allocation2 + $0xb1] sm:$0xff]  ;;  %v6466_v53 = vld [vmem:[#allocation2 + $0xc1] sm:$0xff] }
  0x21   :  { %5808 = vmatpush3.bf16.msra.mxu0 %v5805_v45  ;;  %v6477_v55 = vld [vmem:[#allocation2 + $0xd1] sm:$0xff] }
  0x22   :  { %5810 = vmatprep.subr.bf16.mxu0 %v5809_v50 }
  0x23   :  { %5206 = vmatmul.mubr.msk.f32.gmra.mrb[4].mxu0 %vm21_vm0, %v6442_v43 }
  0x24   :  { %5208 = vmatprep.mubr.msk.f32.mxu0 %vm21_vm0, %v6444_v44 }
  0x27   :  { %5209 = vmatmul.mubr.msk.f32.gmra.mrb[6].mxu0 %vm21_vm0, %v6456_v48 }
  0x28   :  { %5211 = vmatprep.mubr.msk.f32.mxu0 %vm21_vm0, %v175_v49 }
  0x2b   :  { %5212 = vmatmul.mubr.msk.f32.gmra.mrb[8].mxu0 %vm21_vm0, %v6461_v51 }
  0x2c   :  { %5214 = vmatprep.mubr.msk.f32.mxu0 %vm21_vm0, %v6466_v53 }
  0x2d   :  { %10 = vsyncpa [#allocation5], 0  ;;  %v6479_v56 = vld [vmem:[#allocation2 + $0xe1] sm:$0xff]  ;;  %v6485_v57 = vld [vmem:[#allocation2 + $0xf1] sm:$0xff]  ;;  %vm66_vm3 = vcmask 64512   ;;  %vm68_vm4 = vcmask 58368  }
  0x2e   :  { %v6487_v58 = vld [vmem:[#allocation2 + $0x101] sm:$0xff]  ;;  %v6493_v59 = vld [vmem:[#allocation2 + $0x111] sm:$0xff]  ;;  %67 = vst.msk [vmem:[#allocation3] sm:$0xff] %vm66_vm3, %v6209_v5  ;;  %70 = vst.msk [vmem:[#allocation3 + $0xa0] sm:$0xff] %vm66_vm3, %v6209_v5  ;;  %vm78_vm5 = vcmask 57344  }
  0x2f   :  { %5215 = vmatmul.mubr.msk.f32.gmra.mrb[10].mxu0 %vm21_vm0, %v6477_v55  ;;  %v143_v60 = vld [vmem:[#allocation2] sm:$0xff]  ;;  %v4494_v61 = vld [vmem:[%s7517_s1 + $0x90] sm:$0xff]  ;;  %v4495_v62 = vld [vmem:[%s7517_s1 + $0x98] sm:$0xff]  ;;  %73 = vst.msk [vmem:[#allocation3 + $0x90] sm:$0xff] %vm66_vm3, %v6209_v5 }
  0x30   :  { %5217 = vmatprep.mubr.msk.f32.mxu0 %vm21_vm0, %v6479_v56  ;;  %v6504_v63 = vld [vmem:[#allocation2 + $0x10] sm:$0xff]  ;;  %v6506_v0 = vld [vmem:[#allocation2 + $0x20] sm:$0xff]  ;;  %v5813_v1 = vpack.c.bf16 %v4495_v62, %v4494_v61  ;;  %v4497_v3 = vld [vmem:[%s7517_s1 + $0xa8] sm:$0xff]  ;;  %75 = vst.msk [vmem:[#allocation3 + $0x130] sm:$0xff] %vm66_vm3, %v6209_v5 }
  0x31   :  { %v4496_v2 = vld [vmem:[%s7517_s1 + $0xa0] sm:$0xff]  ;;  %v6518_v4 = vld [vmem:[#allocation2 + $0x30] sm:$0xff]  ;;  %v4499_v9 = vld [vmem:[%s7517_s1 + $0xb8] sm:$0xff]  ;;  %69 = vst.msk [vmem:[#allocation3 + $0x8] sm:$0x3] %vm68_vm4, %v6209_v5 }
  0x32   :  { %v6520_v6 = vld [vmem:[#allocation2 + $0x40] sm:$0xff]  ;;  %v5817_v7 = vpack.c.bf16 %v4497_v3, %v4496_v2  ;;  %v4498_v8 = vld [vmem:[%s7517_s1 + $0xb0] sm:$0xff]  ;;  %v4517_v14 = vld [vmem:[%s7517_s1 + $0xc8] sm:$0xff]  ;;  %71 = vst.msk [vmem:[#allocation3 + $0xa8] sm:$0x3] %vm68_vm4, %v6209_v5 }
  0x33   :  { %5218 = vmatmul.mubr.msk.f32.gmra.mrb[12].mxu0 %vm21_vm0, %v6485_v57  ;;  %v6532_v10 = vld [vmem:[#allocation2 + $0x50] sm:$0xff]  ;;  %v6534_v11 = vld [vmem:[#allocation2 + $0x60] sm:$0xff]  ;;  %v5821_v12 = vpack.c.bf16 %v4499_v9, %v4498_v8  ;;  %v4519_v27 = vld [vmem:[%s7517_s1 + $0xd8] sm:$0xff]  ;;  %74 = vst.msk [vmem:[#allocation3 + $0x98] sm:$0x3] %vm68_vm4, %v6209_v5 }
  0x34   :  { %5220 = vmatprep.mubr.msk.f32.mxu0 %vm21_vm0, %v6487_v58  ;;  %v4516_v13 = vld [vmem:[%s7517_s1 + $0xc0] sm:$0xff]  ;;  %v6546_v15 = vld [vmem:[#allocation2 + $0x70] sm:$0xff]  ;;  %v4521_v32 = vld [vmem:[%s7517_s1 + $0xe8] sm:$0xff]  ;;  %76 = vst.msk [vmem:[#allocation3 + $0x138] sm:$0x3] %vm68_vm4, %v6209_v5 }
  0x35   :  { %v151_v16 = vld [vmem:[#allocation2 + $0xa0] sm:$0xff]  ;;  %v5825_v17 = vpack.c.bf16 %v4517_v14, %v4516_v13  ;;  %v6551_v18 = vld [vmem:[#allocation2 + $0xb0] sm:$0xff]  ;;  %v4523_v41 = vld [vmem:[%s7517_s1 + $0xf8] sm:$0xff]  ;;  %79 = vst.msk [vmem:[#allocation3 + $0x10] sm:$0x1] %vm78_vm5, %v6209_v5 }
  0x36   :  { %v6553_v19 = vld [vmem:[#allocation2 + $0xc0] sm:$0xff]  ;;  %v6559_v20 = vld [vmem:[#allocation2 + $0xd0] sm:$0xff]  ;;  %v4541_v49 = vld [vmem:[%s7517_s1 + $0x108] sm:$0xff]  ;;  %80 = vst.msk [vmem:[#allocation3 + $0x20] sm:$0x1] %vm78_vm5, %v6209_v5 }
  0x37   :  { %5221 = vmatmul.mubr.msk.f32.gmra.mrb[14].mxu0 %vm21_vm0, %v6493_v59  ;;  %v6561_v21 = vld [vmem:[#allocation2 + $0xe0] sm:$0xff]  ;;  %v6567_v22 = vld [vmem:[#allocation2 + $0xf0] sm:$0xff]  ;;  %v4543_v9 = vld [vmem:[%s7517_s1 + $0x118] sm:$0xff]  ;;  %81 = vst.msk [vmem:[#allocation3 + $0x30] sm:$0x1] %vm78_vm5, %v6209_v5 }
  0x38   :  { %5239 = vmatprep.mubr.msk.f32.mxu0 %vm21_vm0, %v143_v60  ;;  %v6569_v23 = vld [vmem:[#allocation2 + $0x100] sm:$0xff]  ;;  %v6575_v24 = vld [vmem:[#allocation2 + $0x110] sm:$0xff]  ;;  %v4545_v14 = vld [vmem:[%s7517_s1 + $0x128] sm:$0xff]  ;;  %82 = vst.msk [vmem:[#allocation3 + $0x40] sm:$0x1] %vm78_vm5, %v6209_v5 }
  0x39   :  { %v578_v25 = vld [vmem:[#allocation2 + $0x2] sm:$0xff]  ;;  %v4518_v26 = vld [vmem:[%s7517_s1 + $0xd0] sm:$0xff]  ;;  %83 = vst.msk [vmem:[#allocation3 + $0x50] sm:$0x1] %vm78_vm5, %v6209_v5  ;;  %84 = vst.msk [vmem:[#allocation3 + $0x60] sm:$0x1] %vm78_vm5, %v6209_v5 }
  0x3a   :  { %v6586_v28 = vld [vmem:[#allocation2 + $0x12] sm:$0xff]  ;;  %v6588_v29 = vld [vmem:[#allocation2 + $0x22] sm:$0xff]  ;;  %v5829_v30 = vpack.c.bf16 %v4519_v27, %v4518_v26  ;;  %85 = vst.msk [vmem:[#allocation3 + $0x70] sm:$0x1] %vm78_vm5, %v6209_v5  ;;  %86 = vst.msk [vmem:[#allocation3 + $0x80] sm:$0x1] %vm78_vm5, %v6209_v5 }
  0x3b   :  { %5240 = vmatmul.mubr.msk.f32.vlgmr.msra.gmra.mrb[0].mxu0 %vm21_vm0, %v6504_v63  ;;  %v4520_v31 = vld [vmem:[%s7517_s1 + $0xe0] sm:$0xff]  ;;  %v6600_v35 = vld [vmem:[#allocation2 + $0x32] sm:$0xff]  ;;  %v4565_v27 = vld [vmem:[%s7517_s1 + $0x148] sm:$0xff]  ;;  %87 = vst.msk [vmem:[#allocation3 + $0xb0] sm:$0x1] %vm78_vm5, %v6209_v5 }
  0x3c   :  { %5812 = vmatpush3.bf16.msra.mxu0 %v5809_v50  ;;  %5242 = vmatprep.mubr.msk.f32.mxu0 %vm21_vm0, %v6506_v0  ;;  %v6602_v36 = vld [vmem:[#allocation2 + $0x42] sm:$0xff]  ;;  %v5833_v37 = vpack.c.bf16 %v4521_v32, %v4520_v31  ;;  %v4522_v40 = vld [vmem:[%s7517_s1 + $0xf0] sm:$0xff]  ;;  %88 = vst.msk [vmem:[#allocation3 + $0xc0] sm:$0x1] %vm78_vm5, %v6209_v5  ;;  %89 = vst.msk [vmem:[#allocation3 + $0xd0] sm:$0x1] %vm78_vm5, %v6209_v5 }
  0x3d   :  { %5814 = vmatprep.subr.bf16.mxu0 %v5813_v1  ;;  %v6614_v42 = vld [vmem:[#allocation2 + $0x52] sm:$0xff]  ;;  %v6616_v45 = vld [vmem:[#allocation2 + $0x62] sm:$0xff]  ;;  %v5837_v46 = vpack.c.bf16 %v4523_v41, %v4522_v40  ;;  %90 = vst.msk [vmem:[#allocation3 + $0xe0] sm:$0x1] %vm78_vm5, %v6209_v5  ;;  %91 = vst.msk [vmem:[#allocation3 + $0xf0] sm:$0x1] %vm78_vm5, %v6209_v5 }
  0x3e   :  { %v4540_v47 = vld [vmem:[%s7517_s1 + $0x100] sm:$0xff]  ;;  %v6628_v50 = vld [vmem:[#allocation2 + $0x72] sm:$0xff]  ;;  %92 = vst.msk [vmem:[#allocation3 + $0x100] sm:$0x1] %vm78_vm5, %v6209_v5  ;;  %93 = vst.msk [vmem:[#allocation3 + $0x110] sm:$0x1] %vm78_vm5, %v6209_v5 }
  0x3f   :  { %5243 = vmatmul.mubr.msk.f32.gmra.mrb[2].mxu0 %vm21_vm0, %v6518_v4  ;;  %v586_v52 = vld [vmem:[#allocation2 + $0xa2] sm:$0xff]  ;;  %v5841_v54 = vpack.c.bf16 %v4541_v49, %v4540_v47  ;;  %v6633_v60 = vld [vmem:[#allocation2 + $0xb2] sm:$0xff]  ;;  %94 = vst.msk [vmem:[#allocation3 + $0x120] sm:$0x1] %vm78_vm5, %v6209_v5  ;;  %95 = vst.msk [vmem:[#allocation3 + $0x19] sm:$0x1] %vm78_vm5, %v6209_v5 }
  0x40   :  { %5245 = vmatprep.mubr.msk.f32.mxu0 %vm21_vm0, %v6520_v6  ;;  %5816 = vmatpush3.bf16.msra.mxu0 %v5813_v1  ;;  %v6635_v61 = vld [vmem:[#allocation2 + $0xc2] sm:$0xff]  ;;  %v6641_v62 = vld [vmem:[#allocation2 + $0xd2] sm:$0xff]  ;;  %96 = vst.msk [vmem:[#allocation3 + $0x29] sm:$0x1] %vm78_vm5, %v6209_v5  ;;  %97 = vst.msk [vmem:[#allocation3 + $0x39] sm:$0x1] %vm78_vm5, %v6209_v5 }
  0x41   :  { %5818 = vmatprep.subr.bf16.mxu0 %v5817_v7  ;;  %v6643_v1 = vld [vmem:[#allocation2 + $0xe2] sm:$0xff]  ;;  %v6649_v2 = vld [vmem:[#allocation2 + $0xf2] sm:$0xff]  ;;  %98 = vst.msk [vmem:[#allocation3 + $0x49] sm:$0x1] %vm78_vm5, %v6209_v5  ;;  %99 = vst.msk [vmem:[#allocation3 + $0x59] sm:$0x1] %vm78_vm5, %v6209_v5 }
  0x42   :  { %v6651_v3 = vld [vmem:[#allocation2 + $0x102] sm:$0xff]  ;;  %v4542_v8 = vld [vmem:[%s7517_s1 + $0x110] sm:$0xff]  ;;  %v4571_v49 = vld [vmem:[%s7517_s1 + $0x178] sm:$0xff]  ;;  %100 = vst.msk [vmem:[#allocation3 + $0x69] sm:$0x1] %vm78_vm5, %v6209_v5 }
  0x43   :  { %5246 = vmatmul.mubr.msk.f32.gmra.mrb[4].mxu0 %vm21_vm0, %v6532_v10  ;;  %v4544_v13 = vld [vmem:[%s7517_s1 + $0x120] sm:$0xff]  ;;  %v4566_v32 = vld [vmem:[%s7517_s1 + $0x150] sm:$0xff]  ;;  %101 = vst.msk [vmem:[#allocation3 + $0x79] sm:$0x1] %vm78_vm5, %v6209_v5  ;;  %102 = vst.msk [vmem:[#allocation3 + $0x89] sm:$0x1] %vm78_vm5, %v6209_v5 }
  0x44   :  { %5248 = vmatprep.mubr.msk.f32.mxu0 %vm21_vm0, %v6534_v11  ;;  %5820 = vmatpush3.bf16.msra.mxu0 %v5817_v7  ;;  %v6657_v7 = vld [vmem:[#allocation2 + $0x112] sm:$0xff]  ;;  %v4564_v26 = vld [vmem:[%s7517_s1 + $0x140] sm:$0xff]  ;;  %103 = vst.msk [vmem:[#allocation3 + $0xb9] sm:$0x1] %vm78_vm5, %v6209_v5  ;;  %104 = vst.msk [vmem:[#allocation3 + $0xc9] sm:$0x1] %vm78_vm5, %v6209_v5 }
  0x45   :  { %5822 = vmatprep.subr.bf16.mxu0 %v5821_v12  ;;  %v5857_v31 = vpack.c.bf16 %v4565_v27, %v4564_v26  ;;  %v4568_v41 = vld [vmem:[%s7517_s1 + $0x160] sm:$0xff]  ;;  %v4595_v26 = vld [vmem:[%s7517_s1 + $0x1b8] sm:$0xff]  ;;  %105 = vst.msk [vmem:[#allocation3 + $0xd9] sm:$0x1] %vm78_vm5, %v6209_v5  ;;  %106 = vst.msk [vmem:[#allocation3 + $0xe9] sm:$0x1] %vm78_vm5, %v6209_v5 }
  0x46   :  { %107 = vst.msk [vmem:[#allocation3 + $0xf9] sm:$0x1] %vm78_vm5, %v6209_v5  ;;  %108 = vst.msk [vmem:[#allocation3 + $0x109] sm:$0x1] %vm78_vm5, %v6209_v5 }
  0x47   :  { %5249 = vmatmul.mubr.msk.f32.gmra.mrb[6].mxu0 %vm21_vm0, %v6546_v15  ;;  %109 = vst.msk [vmem:[#allocation3 + $0x119] sm:$0x1] %vm78_vm5, %v6209_v5  ;;  %110 = vst.msk [vmem:[#allocation3 + $0x129] sm:$0x1] %vm78_vm5, %v6209_v5 }
  0x48   :  { %5251 = vmatprep.mubr.msk.f32.mxu0 %vm21_vm0, %v151_v16  ;;  %5824 = vmatpush3.bf16.msra.mxu0 %v5821_v12  ;;  %v5845_v12 = vpack.c.bf16 %v4543_v9, %v4542_v8  ;;  %v5849_v16 = vpack.c.bf16 %v4545_v14, %v4544_v13  ;;  %v4589_v8 = vld [vmem:[%s7517_s1 + $0x188] sm:$0xff]  ;;  %v4590_v13 = vld [vmem:[%s7517_s1 + $0x190] sm:$0xff]  ;;  %v4591_v14 = vld [vmem:[%s7517_s1 + $0x198] sm:$0xff] }
  0x49   :  { %5826 = vmatprep.subr.bf16.mxu0 %v5825_v17  ;;  %v6759_v9 = vld [vmem:[#allocation2 + $0x81] sm:$0xff] }
  0x4b   :  { %5252 = vmatmul.mubr.msk.f32.gmra.mrb[8].mxu0 %vm21_vm0, %v6551_v18 }
  0x4c   :  { %5254 = vmatprep.mubr.msk.f32.mxu0 %vm21_vm0, %v6553_v19 }
  0x4f   :  { %5255 = vmatmul.mubr.msk.f32.gmra.mrb[10].mxu0 %vm21_vm0, %v6559_v20 }
  0x50   :  { %5257 = vmatprep.mubr.msk.f32.mxu0 %vm21_vm0, %v6561_v21 }
  0x53   :  { %5258 = vmatmul.mubr.msk.f32.gmra.mrb[12].mxu0 %vm21_vm0, %v6567_v22 }
  0x54   :  { %5260 = vmatprep.mubr.msk.f32.mxu0 %vm21_vm0, %v6569_v23 }
  0x57   :  { %5261 = vmatmul.mubr.msk.f32.gmra.mrb[14].mxu0 %vm21_vm0, %v6575_v24 }
  0x58   :  { %5279 = vmatprep.mubr.msk.f32.mxu0 %vm21_vm0, %v578_v25 }
  0x5b   :  { %5280 = vmatmul.mubr.msk.f32.vlgmr.msra.gmra.mrb[0].mxu0 %vm21_vm0, %v6586_v28 }
  0x5c   :  { %5828 = vmatpush3.bf16.msra.mxu0 %v5825_v17  ;;  %5282 = vmatprep.mubr.msk.f32.mxu0 %vm21_vm0, %v6588_v29  ;;  %v4547_v17 = vld [vmem:[%s7517_s1 + $0x138] sm:$0xff] }
  0x5d   :  { %5830 = vmatprep.subr.bf16.mxu0 %v5829_v30 }
  0x5f   :  { %5283 = vmatmul.mubr.msk.f32.gmra.mrb[2].mxu0 %vm21_vm0, %v6600_v35 }
  0x60   :  { %5285 = vmatprep.mubr.msk.f32.mxu0 %vm21_vm0, %v6602_v36  ;;  %5832 = vmatpush3.bf16.msra.mxu0 %v5829_v30  ;;  %v6699_v30 = vld [vmem:[#allocation2 + $0x80] sm:$0xff] }
  0x61   :  { %5834 = vmatprep.subr.bf16.mxu0 %v5833_v37 }
  0x63   :  { %5286 = vmatmul.mubr.msk.f32.gmra.mrb[4].mxu0 %vm21_vm0, %v6614_v42 }
  0x64   :  { %5288 = vmatprep.mubr.msk.f32.mxu0 %vm21_vm0, %v6616_v45  ;;  %5836 = vmatpush3.bf16.msra.mxu0 %v5833_v37  ;;  %v4567_v37 = vld [vmem:[%s7517_s1 + $0x158] sm:$0xff] }
  0x65   :  { %5838 = vmatprep.subr.bf16.mxu0 %v5837_v46  ;;  %v5861_v40 = vpack.c.bf16 %v4567_v37, %v4566_v32  ;;  %v4613_v32 = vld [vmem:[%s7517_s1 + $0x1c8] sm:$0xff] }
  0x66   :  { %v6827_v37 = vld [vmem:[#allocation2 + $0x82] sm:$0xff] }
  0x67   :  { %5289 = vmatmul.mubr.msk.f32.gmra.mrb[6].mxu0 %vm21_vm0, %v6628_v50 }
  0x68   :  { %5291 = vmatprep.mubr.msk.f32.mxu0 %vm21_vm0, %v586_v52  ;;  %5840 = vmatpush3.bf16.msra.mxu0 %v5837_v46  ;;  %v4569_v46 = vld [vmem:[%s7517_s1 + $0x168] sm:$0xff] }
  0x69   :  { %5842 = vmatprep.subr.bf16.mxu0 %v5841_v54  ;;  %v5865_v47 = vpack.c.bf16 %v4569_v46, %v4568_v41  ;;  %v4614_v41 = vld [vmem:[%s7517_s1 + $0x1d0] sm:$0xff]  ;;  %v4615_v46 = vld [vmem:[%s7517_s1 + $0x1d8] sm:$0xff] }
  0x6b   :  { %5292 = vmatmul.mubr.msk.f32.gmra.mrb[8].mxu0 %vm21_vm0, %v6633_v60 }
  0x6c   :  { %5294 = vmatprep.mubr.msk.f32.mxu0 %vm21_vm0, %v6635_v61 }
  0x6f   :  { %5295 = vmatmul.mubr.msk.f32.gmra.mrb[10].mxu0 %vm21_vm0, %v6641_v62 }
  0x70   :  { %5297 = vmatprep.mubr.msk.f32.mxu0 %vm21_vm0, %v6643_v1 }
  0x73   :  { %5298 = vmatmul.mubr.msk.f32.gmra.mrb[12].mxu0 %vm21_vm0, %v6649_v2 }
  0x74   :  { %5300 = vmatprep.mubr.msk.f32.mxu0 %vm21_vm0, %v6651_v3 }
  0x77   :  { %5301 = vmatmul.mubr.msk.f32.gmra.mrb[14].mxu0 %vm21_vm0, %v6657_v7 }
  0x78   :  { %5319 = vmatprep.mubr.msk.f32.mxu0 %vm21_vm0, %v6504_v63  ;;  %v4546_v63 = vld [vmem:[%s7517_s1 + $0x130] sm:$0xff] }
  0x79   :  { %v5853_v25 = vpack.c.bf16 %v4547_v17, %v4546_v63  ;;  %v4592_v63 = vld [vmem:[%s7517_s1 + $0x1a0] sm:$0xff] }
  0x7b   :  { %5320 = vmatmul.mubr.msk.f32.vlgmr.msra.gmra.mrb[0].mxu0 %vm21_vm0, %v6506_v0 }
  0x7c   :  { %5844 = vmatpush3.bf16.msra.mxu0 %v5841_v54  ;;  %5322 = vmatprep.mubr.msk.f32.mxu0 %vm21_vm0, %v6518_v4  ;;  %v4588_v54 = vld [vmem:[%s7517_s1 + $0x180] sm:$0xff] }
  0x7d   :  { %5846 = vmatprep.subr.bf16.mxu0 %v5845_v12 }
  0x7f   :  { %5323 = vmatmul.mubr.msk.f32.gmra.mrb[2].mxu0 %vm21_vm0, %v6520_v6 }
  0x80   :  { %5325 = vmatprep.mubr.msk.f32.mxu0 %vm21_vm0, %v6532_v10  ;;  %5848 = vmatpush3.bf16.msra.mxu0 %v5845_v12  ;;  %v5873_v12 = vpack.c.bf16 %v4589_v8, %v4588_v54  ;;  %v4619_v54 = vld [vmem:[%s7517_s1 + $0x1f8] sm:$0xff]  ;;  %v4637_v8 = vld [vmem:[%s7517_s1 + $0x208] sm:$0xff] }
  0x81   :  { %5850 = vmatprep.subr.bf16.mxu0 %v5849_v16 }
  0x83   :  { %5326 = vmatmul.mubr.msk.f32.gmra.mrb[4].mxu0 %vm21_vm0, %v6534_v11 }
  0x84   :  { %5328 = vmatprep.mubr.msk.f32.mxu0 %vm21_vm0, %v6546_v15  ;;  %5852 = vmatpush3.bf16.msra.mxu0 %v5849_v16  ;;  %v5877_v16 = vpack.c.bf16 %v4591_v14, %v4590_v13 }
  0x85   :  { %5854 = vmatprep.subr.bf16.mxu0 %v5853_v25 }
  0x87   :  { %5329 = vmatmul.mubr.msk.f32.gmra.mrb[6].mxu0 %vm21_vm0, %v6699_v30 }
  0x88   :  { %5331 = vmatprep.mubr.msk.f32.mxu0 %vm21_vm0, %v6551_v18  ;;  %5856 = vmatpush3.bf16.msra.mxu0 %v5853_v25  ;;  %v6717_v18 = vld [vmem:[#allocation2 + $0x120] sm:$0xff]  ;;  %v4594_v25 = vld [vmem:[%s7517_s1 + $0x1b0] sm:$0xff] }
  0x89   :  { %5858 = vmatprep.subr.bf16.mxu0 %v5857_v31  ;;  %v5885_v27 = vpack.c.bf16 %v4595_v26, %v4594_v25 }
  0x8b   :  { %5332 = vmatmul.mubr.msk.f32.gmra.mrb[8].mxu0 %vm21_vm0, %v6553_v19 }
  0x8c   :  { %5334 = vmatprep.mubr.msk.f32.mxu0 %vm21_vm0, %v6559_v20 }
  0x8f   :  { %5335 = vmatmul.mubr.msk.f32.gmra.mrb[10].mxu0 %vm21_vm0, %v6561_v21 }
  0x90   :  { %5337 = vmatprep.mubr.msk.f32.mxu0 %vm21_vm0, %v6567_v22 }
  0x93   :  { %5338 = vmatmul.mubr.msk.f32.gmra.mrb[12].mxu0 %vm21_vm0, %v6569_v23 }
  0x94   :  { %5340 = vmatprep.mubr.msk.f32.mxu0 %vm21_vm0, %v6575_v24 }
  0x97   :  { %5341 = vmatmul.mubr.msk.f32.gmra.mrb[14].mxu0 %vm21_vm0, %v6717_v18 }
  0x98   :  { %5359 = vmatprep.mubr.msk.f32.mxu0 %vm21_vm0, %v6414_v33  ;;  %v4570_v33 = vld [vmem:[%s7517_s1 + $0x170] sm:$0xff] }
  0x99   :  { %v5869_v52 = vpack.c.bf16 %v4571_v49, %v4570_v33  ;;  %v4616_v33 = vld [vmem:[%s7517_s1 + $0x1e0] sm:$0xff]  ;;  %v4617_v49 = vld [vmem:[%s7517_s1 + $0x1e8] sm:$0xff] }
  0x9b   :  { %5360 = vmatmul.mubr.msk.f32.vlgmr.msra.gmra.mrb[0].mxu0 %vm21_vm0, %v6416_v34 }
  0x9c   :  { %5860 = vmatpush3.bf16.msra.mxu0 %v5857_v31  ;;  %5362 = vmatprep.mubr.msk.f32.mxu0 %vm21_vm0, %v6428_v38  ;;  %v4612_v31 = vld [vmem:[%s7517_s1 + $0x1c0] sm:$0xff] }
  0x9d   :  { %5862 = vmatprep.subr.bf16.mxu0 %v5861_v40 }
  0x9f   :  { %5363 = vmatmul.mubr.msk.f32.gmra.mrb[2].mxu0 %vm21_vm0, %v6430_v39 }
  0xa0   :  { %5365 = vmatprep.mubr.msk.f32.mxu0 %vm21_vm0, %v6442_v43  ;;  %5864 = vmatpush3.bf16.msra.mxu0 %v5861_v40  ;;  %v5889_v40 = vpack.c.bf16 %v4613_v32, %v4612_v31  ;;  %v7079_v32 = vld [vmem:[%s7519_s3 + $0x10] sm:$0xff] }
  0xa1   :  { %5866 = vmatprep.subr.bf16.mxu0 %v5865_v47 }
  0xa3   :  { %5366 = vmatmul.mubr.msk.f32.gmra.mrb[4].mxu0 %vm21_vm0, %v6444_v44 }
  0xa4   :  { %5368 = vmatprep.mubr.msk.f32.mxu0 %vm21_vm0, %v6456_v48  ;;  %5868 = vmatpush3.bf16.msra.mxu0 %v5865_v47  ;;  %v5893_v47 = vpack.c.bf16 %v4615_v46, %v4614_v41 }
  0xa5   :  { %5870 = vmatprep.subr.bf16.mxu0 %v5869_v52 }
  0xa7   :  { %5369 = vmatmul.mubr.msk.f32.gmra.mrb[6].mxu0 %vm21_vm0, %v6759_v9 }
  0xa8   :  { %5371 = vmatprep.mubr.msk.f32.mxu0 %vm21_vm0, %v6461_v51  ;;  %5872 = vmatpush3.bf16.msra.mxu0 %v5869_v52  ;;  %v6777_v51 = vld [vmem:[#allocation2 + $0x121] sm:$0xff]  ;;  %v5897_v52 = vpack.c.bf16 %v4617_v49, %v4616_v33 }
  0xa9   :  { %5874 = vmatprep.subr.bf16.mxu0 %v5873_v12 }
  0xab   :  { %5372 = vmatmul.mubr.msk.f32.gmra.mrb[8].mxu0 %vm21_vm0, %v6466_v53 }
  0xac   :  { %5374 = vmatprep.mubr.msk.f32.mxu0 %vm21_vm0, %v6477_v55 }
  0xaf   :  { %5375 = vmatmul.mubr.msk.f32.gmra.mrb[10].mxu0 %vm21_vm0, %v6479_v56 }
  0xb0   :  { %5377 = vmatprep.mubr.msk.f32.mxu0 %vm21_vm0, %v6485_v57 }
  0xb3   :  { %5378 = vmatmul.mubr.msk.f32.gmra.mrb[12].mxu0 %vm21_vm0, %v6487_v58 }
  0xb4   :  { %5380 = vmatprep.mubr.msk.f32.mxu0 %vm21_vm0, %v6493_v59 }
  0xb7   :  { %5381 = vmatmul.mubr.msk.f32.gmra.mrb[14].mxu0 %vm21_vm0, %v6777_v51 }
  0xb8   :  { %5399 = vmatprep.mubr.msk.f32.mxu0 %vm21_vm0, %v6586_v28  ;;  %v4593_v28 = vld [vmem:[%s7517_s1 + $0x1a8] sm:$0xff] }
  0xb9   :  { %v5881_v17 = vpack.c.bf16 %v4593_v28, %v4592_v63 }
  0xbb   :  { %5400 = vmatmul.mubr.msk.f32.vlgmr.msra.gmra.mrb[0].mxu0 %vm21_vm0, %v6588_v29 }
  0xbc   :  { %5876 = vmatpush3.bf16.msra.mxu0 %v5873_v12  ;;  %5402 = vmatprep.mubr.msk.f32.mxu0 %vm21_vm0, %v6600_v35 }
  0xbd   :  { %5878 = vmatprep.subr.bf16.mxu0 %v5877_v16 }
  0xbf   :  { %5403 = vmatmul.mubr.msk.f32.gmra.mrb[2].mxu0 %vm21_vm0, %v6602_v36 }
  0xc0   :  { %5405 = vmatprep.mubr.msk.f32.mxu0 %vm21_vm0, %v6614_v42  ;;  %5880 = vmatpush3.bf16.msra.mxu0 %v5877_v16 }
  0xc1   :  { %5882 = vmatprep.subr.bf16.mxu0 %v5881_v17 }
  0xc3   :  { %5406 = vmatmul.mubr.msk.f32.gmra.mrb[4].mxu0 %vm21_vm0, %v6616_v45 }
  0xc4   :  { %5408 = vmatprep.mubr.msk.f32.mxu0 %vm21_vm0, %v6628_v50  ;;  %5884 = vmatpush3.bf16.msra.mxu0 %v5881_v17 }
  0xc5   :  { %5886 = vmatprep.subr.bf16.mxu0 %v5885_v27 }
  0xc7   :  { %5409 = vmatmul.mubr.msk.f32.gmra.mrb[6].mxu0 %vm21_vm0, %v6827_v37 }
  0xc8   :  { %5411 = vmatprep.mubr.msk.f32.mxu0 %vm21_vm0, %v6633_v60  ;;  %5888 = vmatpush3.bf16.msra.mxu0 %v5885_v27  ;;  %v6845_v60 = vld [vmem:[#allocation2 + $0x122] sm:$0xff] }
  0xc9   :  { %5890 = vmatprep.subr.bf16.mxu0 %v5889_v40 }
  0xcb   :  { %5412 = vmatmul.mubr.msk.f32.gmra.mrb[8].mxu0 %vm21_vm0, %v6635_v61 }
  0xcc   :  { %5414 = vmatprep.mubr.msk.f32.mxu0 %vm21_vm0, %v6641_v62 }
  0xcf   :  { %5415 = vmatmul.mubr.msk.f32.gmra.mrb[10].mxu0 %vm21_vm0, %v6643_v1 }
  0xd0   :  { %5417 = vmatprep.mubr.msk.f32.mxu0 %vm21_vm0, %v6649_v2 }
  0xd3   :  { %5418 = vmatmul.mubr.msk.f32.gmra.mrb[12].mxu0 %vm21_vm0, %v6651_v3 }
  0xd4   :  { %5420 = vmatprep.mubr.msk.f32.mxu0 %vm21_vm0, %v6657_v7 }
  0xd7   :  { %5421 = vmatmul.mubr.msk.f32.gmra.mrb[14].mxu0 %vm21_vm0, %v6845_v60 }
  0xd8   :  { %5439 = vmatprep.mubr.msk.f32.mxu0 %vm21_vm0, %v6506_v0  ;;  %v4618_v0 = vld [vmem:[%s7517_s1 + $0x1f0] sm:$0xff] }
  0xdb   :  { %5440 = vmatmul.mubr.msk.f32.vlgmr.msra.gmra.mrb[0].mxu0 %vm21_vm0, %v6518_v4  ;;  %v5901_v4 = vpack.c.bf16 %v4619_v54, %v4618_v0 }
  0xdc   :  { %5892 = vmatpush3.bf16.msra.mxu0 %v5889_v40  ;;  %5442 = vmatprep.mubr.msk.f32.mxu0 %vm21_vm0, %v6520_v6  ;;  %v4636_v6 = vld [vmem:[%s7517_s1 + $0x200] sm:$0xff] }
  0xdd   :  { %5894 = vmatprep.subr.bf16.mxu0 %v5893_v47 }
  0xdf   :  { %5443 = vmatmul.mubr.msk.f32.gmra.mrb[2].mxu0 %vm21_vm0, %v6532_v10  ;;  %v1522_v10 = vld [vmem:[#allocation2 + $0x90] sm:$0xff] }
  0xe0   :  { %5445 = vmatprep.mubr.msk.f32.mxu0 %vm21_vm0, %v6534_v11  ;;  %5896 = vmatpush3.bf16.msra.mxu0 %v5893_v47  ;;  %v5905_v11 = vpack.c.bf16 %v4637_v8, %v4636_v6 }
  0xe1   :  { %5898 = vmatprep.subr.bf16.mxu0 %v5897_v52 }
  0xe3   :  { %5446 = vmatmul.mubr.msk.f32.gmra.mrb[4].mxu0 %vm21_vm0, %v6546_v15  ;;  %v1530_v15 = vld [vmem:[#allocation2 + $0x130] sm:$0xff] }
  0xe4   :  { %5448 = vmatprep.mubr.msk.f32.mxu0 %vm21_vm0, %v6699_v30  ;;  %5900 = vmatpush3.bf16.msra.mxu0 %v5897_v52  ;;  %v4643_v30 = vld [vmem:[%s7517_s1 + $0x238] sm:$0xff] }
  0xe5   :  { %5902 = vmatprep.subr.bf16.mxu0 %v5901_v4 }
  0xe7   :  { %5449 = vmatmul.mubr.msk.f32.gmra.mrb[6].mxu0 %vm21_vm0, %v1522_v10 }
  0xe8   :  { %5451 = vmatprep.mubr.msk.f32.mxu0 %vm21_vm0, %v6553_v19  ;;  %5904 = vmatpush3.bf16.msra.mxu0 %v5901_v4  ;;  %v4638_v19 = vld [vmem:[%s7517_s1 + $0x210] sm:$0xff] }
  0xe9   :  { %5906 = vmatprep.subr.bf16.mxu0 %v5905_v11 }
  0xeb   :  { %5452 = vmatmul.mubr.msk.f32.gmra.mrb[8].mxu0 %vm21_vm0, %v6559_v20  ;;  %v4639_v20 = vld [vmem:[%s7517_s1 + $0x218] sm:$0xff] }
  0xec   :  { %5454 = vmatprep.mubr.msk.f32.mxu0 %vm21_vm0, %v6561_v21  ;;  %v5909_v21 = vpack.c.bf16 %v4639_v20, %v4638_v19 }
  0xef   :  { %5455 = vmatmul.mubr.msk.f32.gmra.mrb[10].mxu0 %vm21_vm0, %v6567_v22  ;;  %v4640_v22 = vld [vmem:[%s7517_s1 + $0x220] sm:$0xff] }
  0xf0   :  { %5457 = vmatprep.mubr.msk.f32.mxu0 %vm21_vm0, %v6569_v23  ;;  %v4641_v23 = vld [vmem:[%s7517_s1 + $0x228] sm:$0xff] }
  0xf3   :  { %5458 = vmatmul.mubr.msk.f32.gmra.mrb[12].mxu0 %vm21_vm0, %v6575_v24  ;;  %v5913_v24 = vpack.c.bf16 %v4641_v23, %v4640_v22 }
  0xf4   :  { %5460 = vmatprep.mubr.msk.f32.mxu0 %vm21_vm0, %v6717_v18 }
  0xf7   :  { %5461 = vmatmul.mubr.msk.f32.gmra.mrb[14].mxu0 %vm21_vm0, %v1530_v15 }
  0xf8   :  { %5479 = vmatprep.mubr.msk.f32.mxu0 %vm21_vm0, %v6416_v34  ;;  %v4642_v34 = vld [vmem:[%s7517_s1 + $0x230] sm:$0xff] }
  0xfb   :  { %5480 = vmatmul.mubr.msk.f32.vlgmr.msra.gmra.mrb[0].mxu0 %vm21_vm0, %v6428_v38  ;;  %v5917_v38 = vpack.c.bf16 %v4643_v30, %v4642_v34 }
  0xfc   :  { %5908 = vmatpush3.bf16.msra.mxu0 %v5905_v11  ;;  %5482 = vmatprep.mubr.msk.f32.mxu0 %vm21_vm0, %v6430_v39  ;;  %v1756_v39 = vld [vmem:[#allocation2 + $0x91] sm:$0xff] }
  0xfd   :  { %5910 = vmatprep.subr.bf16.mxu0 %v5909_v21 }
  0xff   :  { %5483 = vmatmul.mubr.msk.f32.gmra.mrb[2].mxu0 %vm21_vm0, %v6442_v43  ;;  %v1764_v43 = vld [vmem:[#allocation2 + $0x131] sm:$0xff] }
 0x100   :  { %5485 = vmatprep.mubr.msk.f32.mxu0 %vm21_vm0, %v6444_v44  ;;  %5912 = vmatpush3.bf16.msra.mxu0 %v5909_v21  ;;  %v1990_v44 = vld [vmem:[#allocation2 + $0x92] sm:$0xff] }
 0x101   :  { %5914 = vmatprep.subr.bf16.mxu0 %v5913_v24 }
 0x103   :  { %5486 = vmatmul.mubr.msk.f32.gmra.mrb[4].mxu0 %vm21_vm0, %v6456_v48  ;;  %v1998_v48 = vld [vmem:[#allocation2 + $0x132] sm:$0xff] }
 0x104   :  { %5488 = vmatprep.mubr.msk.f32.mxu0 %vm21_vm0, %v6759_v9  ;;  %5916 = vmatpush3.bf16.msra.mxu0 %v5913_v24 }
 0x105   :  { %5918 = vmatprep.subr.bf16.mxu0 %v5917_v38 }
 0x107   :  { %5489 = vmatmul.mubr.msk.f32.gmra.mrb[6].mxu0 %vm21_vm0, %v1756_v39 }
 0x108   :  { %5491 = vmatprep.mubr.msk.f32.mxu0 %vm21_vm0, %v6466_v53  ;;  %5920 = vmatpush3.bf16.msra.mxu0 %v5917_v38  ;;  %v4661_v53 = vld [vmem:[%s7519_s3 + $0x8] sm:$0xff] }
 0x109   :  { %5543 = vmatprep.subr.mxu1 %v4661_v53 }
 0x10a   :  { %5544 = vmatpush3.msra.mxu1 %v4661_v53 }
 0x10b   :  { %5492 = vmatmul.mubr.msk.f32.gmra.mrb[8].mxu0 %vm21_vm0, %v6477_v55  ;;  %v2321_v55 = vld [vmem:[#allocation3 + $0x1] sm:$0xff] }
 0x10c   :  { %5494 = vmatprep.mubr.msk.f32.mxu0 %vm21_vm0, %v6479_v56  ;;  %5545 = vmatprep.mubr.msk.f32.mxu1 %vm66_vm3, %v2321_v55  ;;  %v2320_v56 = vld [vmem:[%s7519_s3] sm:$0xff] }
 0x10d   :  { %5569 = vmatprep.subr.mxu1 %v2320_v56 }
 0x10f   :  { %5495 = vmatmul.mubr.msk.f32.gmra.mrb[10].mxu0 %vm21_vm0, %v6485_v57  ;;  %v7059_v57 = vld [vmem:[%s7518_s2] ss:$0 sm:$0xff] }
 0x110   :  { %5497 = vmatprep.mubr.msk.f32.mxu0 %vm21_vm0, %v6487_v58 }
 0x113   :  { %5498 = vmatmul.mubr.msk.f32.gmra.mrb[12].mxu0 %vm21_vm0, %v6493_v59 }
 0x114   :  { %5500 = vmatprep.mubr.msk.f32.mxu0 %vm21_vm0, %v6777_v51 }
 0x117   :  { %5501 = vmatmul.mubr.msk.f32.gmra.mrb[14].mxu0 %vm21_vm0, %v1764_v43  ;;  %v2329_v43 = vld [vmem:[#allocation3 + $0xa1] sm:$0xff] }
 0x118   :  { %5519 = vmatprep.mubr.msk.f32.mxu0 %vm21_vm0, %v6588_v29 }
 0x11b   :  { %5520 = vmatmul.mubr.msk.f32.vlgmr.msra.gmra.mrb[0].mxu0 %vm21_vm0, %v6600_v35 }
 0x11c   :  { %5522 = vmatprep.mubr.msk.f32.mxu0 %vm21_vm0, %v6602_v36 }
 0x11f   :  { %5523 = vmatmul.mubr.msk.f32.gmra.mrb[2].mxu0 %vm21_vm0, %v6614_v42 }
 0x120   :  { %5525 = vmatprep.mubr.msk.f32.mxu0 %vm21_vm0, %v6616_v45 }
 0x123   :  { %5526 = vmatmul.mubr.msk.f32.gmra.mrb[4].mxu0 %vm21_vm0, %v6628_v50 }
 0x124   :  { %5528 = vmatprep.mubr.msk.f32.mxu0 %vm21_vm0, %v6827_v37 }
 0x127   :  { %5529 = vmatmul.mubr.msk.f32.gmra.mrb[6].mxu0 %vm21_vm0, %v1990_v44 }
 0x128   :  { %5531 = vmatprep.mubr.msk.f32.mxu0 %vm21_vm0, %v6635_v61 }
 0x12b   :  { %5532 = vmatmul.mubr.msk.f32.gmra.mrb[8].mxu0 %vm21_vm0, %v6641_v62 }
 0x12c   :  { %5534 = vmatprep.mubr.msk.f32.mxu0 %vm21_vm0, %v6643_v1 }
 0x12f   :  { %5535 = vmatmul.mubr.msk.f32.gmra.mrb[10].mxu0 %vm21_vm0, %v6649_v2 }
 0x130   :  { %5537 = vmatprep.mubr.msk.f32.mxu0 %vm21_vm0, %v6651_v3 }
 0x133   :  { %5538 = vmatmul.mubr.msk.f32.gmra.mrb[12].mxu0 %vm21_vm0, %v6657_v7 }
 0x134   :  { %5540 = vmatprep.mubr.msk.f32.mxu0 %vm21_vm0, %v6845_v60 }
 0x137   :  { %5541 = vmatmul.mubr.msk.f32.gmra.mrb[14].mxu0 %vm21_vm0, %v1998_v48 }
 0x1ee   :  { %v5521_v5 = vpop.f32.mrb[0].mxu0 }
 0x1ef   :  { %v2225_v58 = vadd.f32 %v5521_v5, %v7059_v57  ;;  %v2122_v59 = vpop.f32.mrb[1].mxu0 }
 0x1f0   :  { %v2224_v29 = vadd.f32 %v7059_v57, %v2122_v59 }
 0x1f1   :  { %vm2241_vm6 = vcmp.gt.f32.partialorder %v2225_v58, 0.0  ;;  %v2257_v35 = vmul.f32 0.01, %v2225_v58 }
 0x1f2   :  { %vm2240_vm7 = vcmp.gt.f32.partialorder %v2224_v29, 0.0  ;;  %v2256_v36 = vmul.f32 0.01, %v2224_v29  ;;  %v5524_v42 = vpop.f32.mrb[2].mxu0 }
 0x1f3   :  { %v2273_v45 = vsel %vm2241_vm6, %v2225_v58, %v2257_v35  ;;  %v2227_v50 = vadd.f32 %v5524_v42, %v7059_v57  ;;  %v2132_v61 = vpop.f32.mrb[3].mxu0 }
 0x1f4   :  { %2289 = vst.msk [vmem:[#allocation3 + $0x21] sm:$0xff] %vm66_vm3, %v2273_v45  ;;  %v2272_v62 = vsel %vm2240_vm7, %v2224_v29, %v2256_v36  ;;  %v2226_v1 = vadd.f32 %v7059_v57, %v2132_v61 }
 0x1f5   :  { %2288 = vst.msk [vmem:[#allocation3 + $0x11] sm:$0xff] %vm66_vm3, %v2272_v62  ;;  %vm2243_vm8 = vcmp.gt.f32.partialorder %v2227_v50, 0.0  ;;  %v2259_v2 = vmul.f32 0.01, %v2227_v50 }
 0x1f6   :  { %vm2242_vm9 = vcmp.gt.f32.partialorder %v2226_v1, 0.0  ;;  %v2258_v3 = vmul.f32 0.01, %v2226_v1  ;;  %v5527_v7 = vpop.f32.mrb[4].mxu0 }
 0x1f7   :  { %v2275_v18 = vsel %vm2243_vm8, %v2227_v50, %v2259_v2  ;;  %v2229_v9 = vadd.f32 %v5527_v7, %v7059_v57  ;;  %v2142_v12 = vpop.f32.mrb[5].mxu0 }
 0x1f8   :  { %2291 = vst.msk [vmem:[#allocation3 + $0x41] sm:$0xff] %vm66_vm3, %v2275_v18  ;;  %v2274_v51 = vsel %vm2242_vm9, %v2226_v1, %v2258_v3  ;;  %v2228_v13 = vadd.f32 %v7059_v57, %v2142_v12  ;;  %v2304_v18 = vld [vmem:[#allocation3] sm:$0xff] }
 0x1f9   :  { %2290 = vst.msk [vmem:[#allocation3 + $0x31] sm:$0xff] %vm66_vm3, %v2274_v51  ;;  %vm2245_vm10 = vcmp.gt.f32.partialorder %v2229_v9, 0.0  ;;  %v2261_v14 = vmul.f32 0.01, %v2229_v9  ;;  %v4711_v51 = vld [vmem:[%s7519_s3 + $0x18] sm:$0xff] }
 0x1fa   :  { %vm2244_vm11 = vcmp.gt.f32.partialorder %v2228_v13, 0.0  ;;  %v2260_v16 = vmul.f32 0.01, %v2228_v13  ;;  %v5530_v63 = vpop.f32.mrb[6].mxu0 }
 0x1fb   :  { %v2277_v28 = vsel %vm2245_vm10, %v2229_v9, %v2261_v14  ;;  %v2231_v17 = vadd.f32 %v5530_v63, %v7059_v57  ;;  %v2152_v25 = vpop.f32.mrb[7].mxu0  ;;  %v7084_v40 = vld [vmem:[#allocation3 + $0x21] sm:$0xff] }
 0x1fc   :  { %2293 = vst.msk [vmem:[#allocation3 + $0x61] sm:$0xff] %vm66_vm3, %v2277_v28  ;;  %v2276_v26 = vsel %vm2244_vm11, %v2228_v13, %v2260_v16  ;;  %v2230_v27 = vadd.f32 %v7059_v57, %v2152_v25  ;;  %v7074_v31 = vld [vmem:[#allocation3 + $0x11] sm:$0xff]  ;;  %v7164_v13 = vld [vmem:[#allocation3 + $0x20] sm:$0xff] }
 0x1fd   :  { %2292 = vst.msk [vmem:[#allocation3 + $0x51] sm:$0xff] %vm66_vm3, %v2276_v26  ;;  %vm2247_vm12 = vcmp.gt.f32.partialorder %v2231_v17, 0.0  ;;  %v2263_v37 = vmul.f32 0.01, %v2231_v17  ;;  %5546 = vmatmul.mubr.msk.f32.vlgmr.msra.gmra.mrb[0].mxu1 %vm66_vm3, %v7074_v31  ;;  %v7157_v12 = vld [vmem:[#allocation3 + $0x10] sm:$0xff] }
 0x1fe   :  { %vm2246_vm13 = vcmp.gt.f32.partialorder %v2230_v27, 0.0  ;;  %v2262_v60 = vmul.f32 0.01, %v2230_v27  ;;  %v5533_v41 = vpop.f32.mrb[8].mxu0  ;;  %5548 = vmatprep.mubr.msk.f32.mxu1 %vm66_vm3, %v7084_v40  ;;  %5570 = vmatpush3.msra.mxu1 %v2320_v56 }
 0x1ff   :  { %v2279_v46 = vsel %vm2247_vm12, %v2231_v17, %v2263_v37  ;;  %v2233_v47 = vadd.f32 %v5533_v41, %v7059_v57  ;;  %v2162_v33 = vpop.f32.mrb[9].mxu0  ;;  %5595 = vmatprep.subr.mxu1 %v7079_v32  ;;  %v7097_v4 = vld [vmem:[#allocation3 + $0x41] sm:$0xff] }
 0x200   :  { %2295 = vst.msk [vmem:[#allocation3 + $0x81] sm:$0xff] %vm66_vm3, %v2279_v46  ;;  %v2278_v49 = vsel %vm2246_vm13, %v2230_v27, %v2262_v60  ;;  %v2232_v52 = vadd.f32 %v7059_v57, %v2162_v33  ;;  %v7092_v0 = vld [vmem:[#allocation3 + $0x31] sm:$0xff]  ;;  %v7173_v16 = vld [vmem:[#allocation3 + $0x40] sm:$0xff] }
 0x201   :  { %2294 = vst.msk [vmem:[#allocation3 + $0x71] sm:$0xff] %vm66_vm3, %v2278_v49  ;;  %vm2249_vm14 = vcmp.gt.f32.partialorder %v2233_v47, 0.0  ;;  %v2265_v54 = vmul.f32 0.01, %v2233_v47  ;;  %5549 = vmatmul.mubr.msk.f32.gmra.mrb[2].mxu1 %vm66_vm3, %v7092_v0  ;;  %v7169_v14 = vld [vmem:[#allocation3 + $0x30] sm:$0xff]  ;;  %v2312_v17 = vld [vmem:[#allocation3 + $0xa0] sm:$0xff] }
 0x202   :  { %vm2248_vm15 = vcmp.gt.f32.partialorder %v2232_v52, 0.0  ;;  %v2264_v6 = vmul.f32 0.01, %v2232_v52  ;;  %v5536_v8 = vpop.f32.mrb[10].mxu0  ;;  %5551 = vmatprep.mubr.msk.f32.mxu1 %vm66_vm3, %v7097_v4  ;;  %v2725_v46 = vld [vmem:[#allocation3 + $0x2] sm:$0xff]  ;;  %v7216_v33 = vld [vmem:[#allocation3 + $0x12] sm:$0xff] }
 0x203   :  { %v2281_v10 = vsel %vm2249_vm14, %v2233_v47, %v2265_v54  ;;  %v2235_v11 = vadd.f32 %v5536_v8, %v7059_v57  ;;  %v2172_v15 = vpop.f32.mrb[11].mxu0  ;;  %v7109_v23 = vld [vmem:[#allocation3 + $0x61] sm:$0xff]  ;;  %v7227_v54 = vld [vmem:[#allocation3 + $0x32] sm:$0xff] }
 0x204   :  { %2297 = vst.msk [vmem:[#allocation3 + $0xc1] sm:$0xff] %vm66_vm3, %v2281_v10  ;;  %v2280_v19 = vsel %vm2248_vm15, %v2232_v52, %v2264_v6  ;;  %v2234_v20 = vadd.f32 %v7059_v57, %v2172_v15  ;;  %v7104_v21 = vld [vmem:[#allocation3 + $0x51] sm:$0xff]  ;;  %v7181_v28 = vld [vmem:[#allocation3 + $0x60] sm:$0xff] }
 0x205   :  { %2296 = vst.msk [vmem:[#allocation3 + $0xb1] sm:$0xff] %vm66_vm3, %v2280_v19  ;;  %vm2251_vm2 = vcmp.gt.f32.partialorder %v2235_v11, 0.0  ;;  %v2267_v22 = vmul.f32 0.01, %v2235_v11  ;;  %5552 = vmatmul.mubr.msk.f32.gmra.mrb[4].mxu1 %vm66_vm3, %v7104_v21  ;;  %v7177_v63 = vld [vmem:[#allocation3 + $0x50] sm:$0xff]  ;;  %v4728_v49 = vld [vmem:[%s7519_s3 + $0x20] sm:$0xff] }
 0x206   :  { %vm2250_vm4 = vcmp.gt.f32.partialorder %v2234_v20, 0.0  ;;  %v2266_v24 = vmul.f32 0.01, %v2234_v20  ;;  %v5539_v34 = vpop.f32.mrb[12].mxu0  ;;  %5554 = vmatprep.mubr.msk.f32.mxu1 %vm66_vm3, %v7109_v23  ;;  %v7223_v52 = vld [vmem:[#allocation3 + $0x22] sm:$0xff]  ;;  %v7235_v8 = vld [vmem:[#allocation3 + $0x52] sm:$0xff] }
 0x207   :  { %v2283_v30 = vsel %vm2251_vm2, %v2235_v11, %v2267_v22  ;;  %v2237_v38 = vadd.f32 %v5539_v34, %v7059_v57  ;;  %v2182_v39 = vpop.f32.mrb[13].mxu0  ;;  %v7231_v6 = vld [vmem:[#allocation3 + $0x42] sm:$0xff] }
 0x208   :  { %2299 = vst.msk [vmem:[#allocation3 + $0xe1] sm:$0xff] %vm66_vm3, %v2283_v30  ;;  %v2282_v44 = vsel %vm2250_vm4, %v2234_v20, %v2266_v24  ;;  %v2236_v48 = vadd.f32 %v7059_v57, %v2182_v39  ;;  %v7116_v53 = vld [vmem:[#allocation3 + $0x71] sm:$0xff]  ;;  %v7239_v10 = vld [vmem:[#allocation3 + $0x62] sm:$0xff] }
 0x209   :  { %2298 = vst.msk [vmem:[#allocation3 + $0xd1] sm:$0xff] %vm66_vm3, %v2282_v44  ;;  %vm2253_vm5 = vcmp.gt.f32.partialorder %v2237_v38, 0.0  ;;  %v2269_v55 = vmul.f32 0.01, %v2237_v38  ;;  %5555 = vmatmul.mubr.msk.f32.gmra.mrb[6].mxu1 %vm66_vm3, %v7116_v53  ;;  %v7185_v25 = vld [vmem:[#allocation3 + $0x70] sm:$0xff]  ;;  %v2733_v11 = vld [vmem:[#allocation3 + $0xa2] sm:$0xff] }
 0x20a   :  { %vm2252_vm6 = vcmp.gt.f32.partialorder %v2236_v48, 0.0  ;;  %v2268_v56 = vmul.f32 0.01, %v2236_v48  ;;  %v5542_v5 = vpop.f32.mrb[14].mxu0  ;;  %5557 = vmatprep.mubr.msk.f32.mxu1 %vm66_vm3, %v2329_v43  ;;  %v7243_v15 = vld [vmem:[#allocation3 + $0x72] sm:$0xff]  ;;  %v4745_v39 = vld [vmem:[%s7519_s3 + $0x28] sm:$0xff] }
 0x20b   :  { %v2285_v58 = vsel %vm2253_vm5, %v2237_v38, %v2269_v55  ;;  %v2239_v59 = vadd.f32 %v5542_v5, %v7059_v57  ;;  %v2192_v29 = vpop.f32.mrb[15].mxu0  ;;  %v7130_v50 = vld [vmem:[#allocation3 + $0xc1] sm:$0xff] }
 0x20c   :  { %2301 = vst.msk [vmem:[#allocation3 + $0x101] sm:$0xff] %vm66_vm3, %v2285_v58  ;;  %v2284_v35 = vsel %vm2252_vm6, %v2236_v48, %v2268_v56  ;;  %v2238_v36 = vadd.f32 %v7059_v57, %v2192_v29  ;;  %v7125_v42 = vld [vmem:[#allocation3 + $0xb1] sm:$0xff]  ;;  %v7191_v27 = vld [vmem:[#allocation3 + $0xc0] sm:$0xff] }
 0x20d   :  { %2300 = vst.msk [vmem:[#allocation3 + $0xf1] sm:$0xff] %vm66_vm3, %v2284_v35  ;;  %vm2255_vm7 = vcmp.gt.f32.partialorder %v2239_v59, 0.0  ;;  %v2271_v45 = vmul.f32 0.01, %v2239_v59  ;;  %5558 = vmatmul.mubr.msk.f32.gmra.mrb[8].mxu1 %vm66_vm3, %v7125_v42  ;;  %v2313_v26 = vld [vmem:[#allocation3 + $0xb0] sm:$0xff]  ;;  %v7252_v20 = vld [vmem:[#allocation3 + $0xc2] sm:$0xff] }
 0x20e   :  { %vm2254_vm8 = vcmp.gt.f32.partialorder %v2238_v36, 0.0  ;;  %v2270_v61 = vmul.f32 0.01, %v2238_v36  ;;  %5560 = vmatprep.mubr.msk.f32.mxu1 %vm66_vm3, %v7130_v50  ;;  %v7248_v19 = vld [vmem:[#allocation3 + $0xb2] sm:$0xff]  ;;  %v2959_v43 = vld [vmem:[#allocation3 + $0x80] sm:$0xff] }
 0x20f   :  { %v2287_v62 = vsel %vm2255_vm7, %v2239_v59, %v2271_v45  ;;  %v7140_v2 = vld [vmem:[#allocation3 + $0xe1] sm:$0xff]  ;;  %v4762_v48 = vld [vmem:[%s7519_s3 + $0x30] sm:$0xff]  ;;  %v4779_v56 = vld [vmem:[%s7519_s3 + $0x38] sm:$0xff] }
 0x210   :  { %2303 = vst.msk [vmem:[#allocation3 + $0x121] sm:$0xff] %vm66_vm3, %v2287_v62  ;;  %v2286_v57 = vsel %vm2254_vm8, %v2238_v36, %v2270_v61  ;;  %v7135_v1 = vld [vmem:[#allocation3 + $0xd1] sm:$0xff]  ;;  %v7199_v37 = vld [vmem:[#allocation3 + $0xe0] sm:$0xff] }
 0x211   :  { %2302 = vst.msk [vmem:[#allocation3 + $0x111] sm:$0xff] %vm66_vm3, %v2286_v57  ;;  %5561 = vmatmul.mubr.msk.f32.gmra.mrb[10].mxu1 %vm66_vm3, %v7135_v1  ;;  %v7256_v22 = vld [vmem:[#allocation3 + $0xd2] sm:$0xff]  ;;  %v7260_v24 = vld [vmem:[#allocation3 + $0xe2] sm:$0xff] }
 0x212   :  { %5563 = vmatprep.mubr.msk.f32.mxu1 %vm66_vm3, %v7140_v2  ;;  %v3413_v5 = vld [vmem:[#allocation3 + $0x82] sm:$0xff]  ;;  %v3641_v29 = vld [vmem:[#allocation3 + $0x90] sm:$0xff] }
 0x213   :  { %v7148_v7 = vld [vmem:[#allocation3 + $0x101] sm:$0xff]  ;;  %v3649_v35 = vld [vmem:[#allocation3 + $0x130] sm:$0xff] }
 0x214   :  { %v7144_v3 = vld [vmem:[#allocation3 + $0xf1] sm:$0xff]  ;;  %v7207_v41 = vld [vmem:[#allocation3 + $0x100] sm:$0xff] }
 0x215   :  { %5564 = vmatmul.mubr.msk.f32.gmra.mrb[12].mxu1 %vm66_vm3, %v7144_v3  ;;  %v7203_v60 = vld [vmem:[#allocation3 + $0xf0] sm:$0xff]  ;;  %v7268_v30 = vld [vmem:[#allocation3 + $0x102] sm:$0xff] }
 0x216   :  { %5566 = vmatprep.mubr.msk.f32.mxu1 %vm66_vm3, %v7148_v7  ;;  %v7264_v34 = vld [vmem:[#allocation3 + $0xf2] sm:$0xff]  ;;  %v4796_v59 = vld [vmem:[%s7519_s3 + $0x40] sm:$0xff] }
 0x217   :  { %v2967_v44 = vld [vmem:[#allocation3 + $0x120] sm:$0xff]  ;;  %v3868_v36 = vld [vmem:[#allocation3 + $0x91] sm:$0xff] }
 0x218   :  { %v7152_v9 = vld [vmem:[#allocation3 + $0x111] sm:$0xff]  ;;  %v3194_v55 = vld [vmem:[#allocation3 + $0x121] sm:$0xff] }
 0x219   :  { %5567 = vmatmul.mubr.msk.f32.gmra.mrb[14].mxu1 %vm66_vm3, %v7152_v9  ;;  %v7211_v47 = vld [vmem:[#allocation3 + $0x110] sm:$0xff]  ;;  %v3421_v58 = vld [vmem:[#allocation3 + $0x122] sm:$0xff] }
 0x21a   :  { %5571 = vmatprep.mubr.msk.f32.mxu1 %vm66_vm3, %v2304_v18  ;;  %v7272_v38 = vld [vmem:[#allocation3 + $0x112] sm:$0xff] }
 0x21d   :  { %5572 = vmatmul.mubr.msk.f32.vlgmr.msra.gmra.mrb[0].mxu1 %vm66_vm3, %v7157_v12 }
 0x21e   :  { %5574 = vmatprep.mubr.msk.f32.mxu1 %vm66_vm3, %v7164_v13  ;;  %5596 = vmatpush3.msra.mxu1 %v7079_v32  ;;  %v7195_v32 = vld [vmem:[#allocation3 + $0xd0] sm:$0xff] }
 0x21f   :  { %5621 = vmatprep.subr.mxu1 %v4711_v51 }
 0x221   :  { %5575 = vmatmul.mubr.msk.f32.gmra.mrb[2].mxu1 %vm66_vm3, %v7169_v14 }
 0x222   :  { %5577 = vmatprep.mubr.msk.f32.mxu1 %vm66_vm3, %v7173_v16 }
 0x225   :  { %5578 = vmatmul.mubr.msk.f32.gmra.mrb[4].mxu1 %vm66_vm3, %v7177_v63 }
 0x226   :  { %5580 = vmatprep.mubr.msk.f32.mxu1 %vm66_vm3, %v7181_v28 }
 0x229   :  { %5581 = vmatmul.mubr.msk.f32.gmra.mrb[6].mxu1 %vm66_vm3, %v7185_v25 }
 0x22a   :  { %5583 = vmatprep.mubr.msk.f32.mxu1 %vm66_vm3, %v2312_v17 }
 0x22d   :  { %5584 = vmatmul.mubr.msk.f32.gmra.mrb[8].mxu1 %vm66_vm3, %v2313_v26 }
 0x22e   :  { %5586 = vmatprep.mubr.msk.f32.mxu1 %vm66_vm3, %v7191_v27 }
 0x231   :  { %5587 = vmatmul.mubr.msk.f32.gmra.mrb[10].mxu1 %vm66_vm3, %v7195_v32 }
 0x232   :  { %5589 = vmatprep.mubr.msk.f32.mxu1 %vm66_vm3, %v7199_v37 }
 0x235   :  { %5590 = vmatmul.mubr.msk.f32.gmra.mrb[12].mxu1 %vm66_vm3, %v7203_v60 }
 0x236   :  { %5592 = vmatprep.mubr.msk.f32.mxu1 %vm66_vm3, %v7207_v41 }
 0x239   :  { %5593 = vmatmul.mubr.msk.f32.gmra.mrb[14].mxu1 %vm66_vm3, %v7211_v47 }
 0x23a   :  { %5597 = vmatprep.mubr.msk.f32.mxu1 %vm66_vm3, %v2725_v46 }
 0x23d   :  { %5598 = vmatmul.mubr.msk.f32.vlgmr.msra.gmra.mrb[0].mxu1 %vm66_vm3, %v7216_v33 }
 0x23e   :  { %5600 = vmatprep.mubr.msk.f32.mxu1 %vm66_vm3, %v7223_v52  ;;  %5622 = vmatpush3.msra.mxu1 %v4711_v51 }
 0x23f   :  { %5647 = vmatprep.subr.mxu1 %v4728_v49 }
 0x241   :  { %5601 = vmatmul.mubr.msk.f32.gmra.mrb[2].mxu1 %vm66_vm3, %v7227_v54 }
 0x242   :  { %5603 = vmatprep.mubr.msk.f32.mxu1 %vm66_vm3, %v7231_v6 }
 0x245   :  { %5604 = vmatmul.mubr.msk.f32.gmra.mrb[4].mxu1 %vm66_vm3, %v7235_v8 }
 0x246   :  { %5606 = vmatprep.mubr.msk.f32.mxu1 %vm66_vm3, %v7239_v10 }
 0x249   :  { %5607 = vmatmul.mubr.msk.f32.gmra.mrb[6].mxu1 %vm66_vm3, %v7243_v15 }
 0x24a   :  { %5609 = vmatprep.mubr.msk.f32.mxu1 %vm66_vm3, %v2733_v11 }
 0x24d   :  { %5610 = vmatmul.mubr.msk.f32.gmra.mrb[8].mxu1 %vm66_vm3, %v7248_v19 }
 0x24e   :  { %5612 = vmatprep.mubr.msk.f32.mxu1 %vm66_vm3, %v7252_v20 }
 0x251   :  { %5613 = vmatmul.mubr.msk.f32.gmra.mrb[10].mxu1 %vm66_vm3, %v7256_v22 }
 0x252   :  { %5615 = vmatprep.mubr.msk.f32.mxu1 %vm66_vm3, %v7260_v24 }
 0x255   :  { %5616 = vmatmul.mubr.msk.f32.gmra.mrb[12].mxu1 %vm66_vm3, %v7264_v34 }
 0x256   :  { %5618 = vmatprep.mubr.msk.f32.mxu1 %vm66_vm3, %v7268_v30 }
 0x259   :  { %5619 = vmatmul.mubr.msk.f32.gmra.mrb[14].mxu1 %vm66_vm3, %v7272_v38 }
 0x25a   :  { %5623 = vmatprep.mubr.msk.f32.mxu1 %vm66_vm3, %v7157_v12 }
 0x25d   :  { %5624 = vmatmul.mubr.msk.f32.vlgmr.msra.gmra.mrb[0].mxu1 %vm66_vm3, %v7164_v13 }
 0x25e   :  { %5626 = vmatprep.mubr.msk.f32.mxu1 %vm66_vm3, %v7169_v14  ;;  %5648 = vmatpush3.msra.mxu1 %v4728_v49 }
 0x25f   :  { %5673 = vmatprep.subr.mxu1 %v4745_v39 }
 0x261   :  { %5627 = vmatmul.mubr.msk.f32.gmra.mrb[2].mxu1 %vm66_vm3, %v7173_v16 }
 0x262   :  { %5629 = vmatprep.mubr.msk.f32.mxu1 %vm66_vm3, %v7177_v63 }
 0x265   :  { %5630 = vmatmul.mubr.msk.f32.gmra.mrb[4].mxu1 %vm66_vm3, %v7181_v28 }
 0x266   :  { %5632 = vmatprep.mubr.msk.f32.mxu1 %vm66_vm3, %v7185_v25 }
 0x269   :  { %5633 = vmatmul.mubr.msk.f32.gmra.mrb[6].mxu1 %vm66_vm3, %v2959_v43 }
 0x26a   :  { %5635 = vmatprep.mubr.msk.f32.mxu1 %vm66_vm3, %v2313_v26 }
 0x26d   :  { %5636 = vmatmul.mubr.msk.f32.gmra.mrb[8].mxu1 %vm66_vm3, %v7191_v27 }
 0x26e   :  { %5638 = vmatprep.mubr.msk.f32.mxu1 %vm66_vm3, %v7195_v32 }
 0x271   :  { %5639 = vmatmul.mubr.msk.f32.gmra.mrb[10].mxu1 %vm66_vm3, %v7199_v37 }
 0x272   :  { %5641 = vmatprep.mubr.msk.f32.mxu1 %vm66_vm3, %v7203_v60 }
 0x275   :  { %5642 = vmatmul.mubr.msk.f32.gmra.mrb[12].mxu1 %vm66_vm3, %v7207_v41 }
 0x276   :  { %5644 = vmatprep.mubr.msk.f32.mxu1 %vm66_vm3, %v7211_v47 }
 0x279   :  { %5645 = vmatmul.mubr.msk.f32.gmra.mrb[14].mxu1 %vm66_vm3, %v2967_v44 }
 0x27a   :  { %5649 = vmatprep.mubr.msk.f32.mxu1 %vm66_vm3, %v7074_v31  ;;  %v3186_v31 = vld [vmem:[#allocation3 + $0x81] sm:$0xff] }
 0x27d   :  { %5650 = vmatmul.mubr.msk.f32.vlgmr.msra.gmra.mrb[0].mxu1 %vm66_vm3, %v7084_v40 }
 0x27e   :  { %5652 = vmatprep.mubr.msk.f32.mxu1 %vm66_vm3, %v7092_v0  ;;  %5674 = vmatpush3.msra.mxu1 %v4745_v39 }
 0x27f   :  { %5699 = vmatprep.subr.mxu1 %v4762_v48 }
 0x281   :  { %5653 = vmatmul.mubr.msk.f32.gmra.mrb[2].mxu1 %vm66_vm3, %v7097_v4 }
 0x282   :  { %5655 = vmatprep.mubr.msk.f32.mxu1 %vm66_vm3, %v7104_v21 }
 0x285   :  { %5656 = vmatmul.mubr.msk.f32.gmra.mrb[4].mxu1 %vm66_vm3, %v7109_v23 }
 0x286   :  { %5658 = vmatprep.mubr.msk.f32.mxu1 %vm66_vm3, %v7116_v53 }
 0x289   :  { %5659 = vmatmul.mubr.msk.f32.gmra.mrb[6].mxu1 %vm66_vm3, %v3186_v31 }
 0x28a   :  { %5661 = vmatprep.mubr.msk.f32.mxu1 %vm66_vm3, %v7125_v42 }
 0x28d   :  { %5662 = vmatmul.mubr.msk.f32.gmra.mrb[8].mxu1 %vm66_vm3, %v7130_v50 }
 0x28e   :  { %5664 = vmatprep.mubr.msk.f32.mxu1 %vm66_vm3, %v7135_v1 }
 0x291   :  { %5665 = vmatmul.mubr.msk.f32.gmra.mrb[10].mxu1 %vm66_vm3, %v7140_v2 }
 0x292   :  { %5667 = vmatprep.mubr.msk.f32.mxu1 %vm66_vm3, %v7144_v3 }
 0x295   :  { %5668 = vmatmul.mubr.msk.f32.gmra.mrb[12].mxu1 %vm66_vm3, %v7148_v7 }
 0x296   :  { %5670 = vmatprep.mubr.msk.f32.mxu1 %vm66_vm3, %v7152_v9 }
 0x299   :  { %5671 = vmatmul.mubr.msk.f32.gmra.mrb[14].mxu1 %vm66_vm3, %v3194_v55 }
 0x29a   :  { %5675 = vmatprep.mubr.msk.f32.mxu1 %vm66_vm3, %v7216_v33 }
 0x29d   :  { %5676 = vmatmul.mubr.msk.f32.vlgmr.msra.gmra.mrb[0].mxu1 %vm66_vm3, %v7223_v52 }
 0x29e   :  { %5678 = vmatprep.mubr.msk.f32.mxu1 %vm66_vm3, %v7227_v54  ;;  %5700 = vmatpush3.msra.mxu1 %v4762_v48 }
 0x29f   :  { %5725 = vmatprep.subr.mxu1 %v4779_v56 }
 0x2a1   :  { %5679 = vmatmul.mubr.msk.f32.gmra.mrb[2].mxu1 %vm66_vm3, %v7231_v6 }
 0x2a2   :  { %5681 = vmatprep.mubr.msk.f32.mxu1 %vm66_vm3, %v7235_v8 }
 0x2a5   :  { %5682 = vmatmul.mubr.msk.f32.gmra.mrb[4].mxu1 %vm66_vm3, %v7239_v10 }
 0x2a6   :  { %5684 = vmatprep.mubr.msk.f32.mxu1 %vm66_vm3, %v7243_v15 }
 0x2a9   :  { %5685 = vmatmul.mubr.msk.f32.gmra.mrb[6].mxu1 %vm66_vm3, %v3413_v5 }
 0x2aa   :  { %5687 = vmatprep.mubr.msk.f32.mxu1 %vm66_vm3, %v7248_v19 }
 0x2ad   :  { %5688 = vmatmul.mubr.msk.f32.gmra.mrb[8].mxu1 %vm66_vm3, %v7252_v20 }
 0x2ae   :  { %5690 = vmatprep.mubr.msk.f32.mxu1 %vm66_vm3, %v7256_v22 }
 0x2b1   :  { %5691 = vmatmul.mubr.msk.f32.gmra.mrb[10].mxu1 %vm66_vm3, %v7260_v24 }
 0x2b2   :  { %5693 = vmatprep.mubr.msk.f32.mxu1 %vm66_vm3, %v7264_v34 }
 0x2b5   :  { %5694 = vmatmul.mubr.msk.f32.gmra.mrb[12].mxu1 %vm66_vm3, %v7268_v30 }
 0x2b6   :  { %5696 = vmatprep.mubr.msk.f32.mxu1 %vm66_vm3, %v7272_v38 }
 0x2b9   :  { %5697 = vmatmul.mubr.msk.f32.gmra.mrb[14].mxu1 %vm66_vm3, %v3421_v58 }
 0x2ba   :  { %5701 = vmatprep.mubr.msk.f32.mxu1 %vm66_vm3, %v7164_v13 }
 0x2bd   :  { %5702 = vmatmul.mubr.msk.f32.vlgmr.msra.gmra.mrb[0].mxu1 %vm66_vm3, %v7169_v14 }
 0x2be   :  { %5704 = vmatprep.mubr.msk.f32.mxu1 %vm66_vm3, %v7173_v16  ;;  %5726 = vmatpush3.msra.mxu1 %v4779_v56 }
 0x2bf   :  { %5751 = vmatprep.subr.mxu1 %v4796_v59 }
 0x2c1   :  { %5705 = vmatmul.mubr.msk.f32.gmra.mrb[2].mxu1 %vm66_vm3, %v7177_v63 }
 0x2c2   :  { %5707 = vmatprep.mubr.msk.f32.mxu1 %vm66_vm3, %v7181_v28 }
 0x2c5   :  { %5708 = vmatmul.mubr.msk.f32.gmra.mrb[4].mxu1 %vm66_vm3, %v7185_v25 }
 0x2c6   :  { %5710 = vmatprep.mubr.msk.f32.mxu1 %vm66_vm3, %v2959_v43 }
 0x2c9   :  { %5711 = vmatmul.mubr.msk.f32.gmra.mrb[6].mxu1 %vm66_vm3, %v3641_v29 }
 0x2ca   :  { %5713 = vmatprep.mubr.msk.f32.mxu1 %vm66_vm3, %v7191_v27 }
 0x2cd   :  { %5714 = vmatmul.mubr.msk.f32.gmra.mrb[8].mxu1 %vm66_vm3, %v7195_v32 }
 0x2ce   :  { %5716 = vmatprep.mubr.msk.f32.mxu1 %vm66_vm3, %v7199_v37 }
 0x2d1   :  { %5717 = vmatmul.mubr.msk.f32.gmra.mrb[10].mxu1 %vm66_vm3, %v7203_v60 }
 0x2d2   :  { %5719 = vmatprep.mubr.msk.f32.mxu1 %vm66_vm3, %v7207_v41 }
 0x2d5   :  { %5720 = vmatmul.mubr.msk.f32.gmra.mrb[12].mxu1 %vm66_vm3, %v7211_v47 }
 0x2d6   :  { %5722 = vmatprep.mubr.msk.f32.mxu1 %vm66_vm3, %v2967_v44 }
 0x2d9   :  { %5723 = vmatmul.mubr.msk.f32.gmra.mrb[14].mxu1 %vm66_vm3, %v3649_v35 }
 0x2da   :  { %5727 = vmatprep.mubr.msk.f32.mxu1 %vm66_vm3, %v7084_v40  ;;  %v3876_v40 = vld [vmem:[#allocation3 + $0x131] sm:$0xff] }
 0x2dd   :  { %5728 = vmatmul.mubr.msk.f32.vlgmr.msra.gmra.mrb[0].mxu1 %vm66_vm3, %v7092_v0  ;;  %v4095_v0 = vld [vmem:[#allocation3 + $0x92] sm:$0xff] }
 0x2de   :  { %5730 = vmatprep.mubr.msk.f32.mxu1 %vm66_vm3, %v7097_v4  ;;  %5752 = vmatpush3.msra.mxu1 %v4796_v59  ;;  %v4103_v4 = vld [vmem:[#allocation3 + $0x132] sm:$0xff] }
 0x2e1   :  { %5731 = vmatmul.mubr.msk.f32.gmra.mrb[2].mxu1 %vm66_vm3, %v7104_v21  ;;  %v7464_v21 = vld [vmem:[%s7520_s4] ss:$0 sm:$0xff]  ;;  %s6210_s4 = smov [#allocation4]  }
 0x2e2   :  { %5733 = vmatprep.mubr.msk.f32.mxu1 %vm66_vm3, %v7109_v23  ;;  %s4444_s8 = sshll.u32 %s6210_s4, 4  ;;  %s4445_s8 = int_to_ptr.vmem [resolvable:$true] %s4444_s8 }
 0x2e3   :  { %s6185_s9 = scalar_lea.vmem %s4445_s8, 32  ;;  %p6190_p1 = scmp.lt.s32.totalorder %s4445_s8, %s4445_s8 }
 0x2e4   :  { %p6186_p0 = scmp.ne.s32.totalorder %s4445_s8, %s6185_s9  ;;  %p6191_p2 = scmp.lt.s32.totalorder %s6185_s9, %s6185_s9 }
 0x2e5   :  { %5734 = vmatmul.mubr.msk.f32.gmra.mrb[4].mxu1 %vm66_vm3, %v7116_v53 }
 0x2e6   :  { %5736 = vmatprep.mubr.msk.f32.mxu1 %vm66_vm3, %v3186_v31  ;;  %p6192_p3 = por %p6191_p2, %p6190_p1 }
 0x2e8   :  { %p6193_p4 = pnand %p6192_p3, %p6186_p0 }
 0x2e9   :  { %5737 = vmatmul.mubr.msk.f32.gmra.mrb[6].mxu1 %vm66_vm3, %v3868_v36 }
 0x2ea   :  { %5739 = vmatprep.mubr.msk.f32.mxu1 %vm66_vm3, %v7130_v50 }
 0x2ed   :  { %5740 = vmatmul.mubr.msk.f32.gmra.mrb[8].mxu1 %vm66_vm3, %v7135_v1 }
 0x2ee   :  { %5742 = vmatprep.mubr.msk.f32.mxu1 %vm66_vm3, %v7140_v2 }
 0x2f1   :  { %5743 = vmatmul.mubr.msk.f32.gmra.mrb[10].mxu1 %vm66_vm3, %v7144_v3 }
 0x2f2   :  { %5745 = vmatprep.mubr.msk.f32.mxu1 %vm66_vm3, %v7148_v7 }
 0x2f5   :  { %5746 = vmatmul.mubr.msk.f32.gmra.mrb[12].mxu1 %vm66_vm3, %v7152_v9 }
 0x2f6   :  { %5748 = vmatprep.mubr.msk.f32.mxu1 %vm66_vm3, %v3194_v55 }
 0x2f9   :  { %5749 = vmatmul.mubr.msk.f32.gmra.mrb[14].mxu1 %vm66_vm3, %v3876_v40 }
 0x2fa   :  { %5753 = vmatprep.mubr.msk.f32.mxu1 %vm66_vm3, %v7223_v52 }
 0x2fd   :  { %5754 = vmatmul.mubr.msk.f32.vlgmr.msra.gmra.mrb[0].mxu1 %vm66_vm3, %v7227_v54 }
 0x2fe   :  { %5756 = vmatprep.mubr.msk.f32.mxu1 %vm66_vm3, %v7231_v6 }
 0x301   :  { %5757 = vmatmul.mubr.msk.f32.gmra.mrb[2].mxu1 %vm66_vm3, %v7235_v8 }
 0x302   :  { %5759 = vmatprep.mubr.msk.f32.mxu1 %vm66_vm3, %v7239_v10 }
 0x305   :  { %5760 = vmatmul.mubr.msk.f32.gmra.mrb[4].mxu1 %vm66_vm3, %v7243_v15 }
 0x306   :  { %5762 = vmatprep.mubr.msk.f32.mxu1 %vm66_vm3, %v3413_v5 }
 0x309   :  { %5763 = vmatmul.mubr.msk.f32.gmra.mrb[6].mxu1 %vm66_vm3, %v4095_v0 }
 0x30a   :  { %5765 = vmatprep.mubr.msk.f32.mxu1 %vm66_vm3, %v7252_v20 }
 0x30d   :  { %5766 = vmatmul.mubr.msk.f32.gmra.mrb[8].mxu1 %vm66_vm3, %v7256_v22 }
 0x30e   :  { %5768 = vmatprep.mubr.msk.f32.mxu1 %vm66_vm3, %v7260_v24 }
 0x311   :  { %5769 = vmatmul.mubr.msk.f32.gmra.mrb[10].mxu1 %vm66_vm3, %v7264_v34 }
 0x312   :  { %5771 = vmatprep.mubr.msk.f32.mxu1 %vm66_vm3, %v7268_v30 }
 0x315   :  { %5772 = vmatmul.mubr.msk.f32.gmra.mrb[12].mxu1 %vm66_vm3, %v7272_v38 }
 0x316   :  { %5774 = vmatprep.mubr.msk.f32.mxu1 %vm66_vm3, %v3421_v58 }
 0x319   :  { %5775 = vmatmul.mubr.msk.f32.gmra.mrb[14].mxu1 %vm66_vm3, %v4103_v4  ;;  %vm4401_vm3 = vcmask 1041409  }
 0x3d0   :  { %v5755_v23 = vpop.f32.mrb[0].mxu1 }
 0x3d1   :  { %v4323_v53 = vadd.f32 %v5755_v23, %v7464_v21  ;;  %v4220_v42 = vpop.f32.mrb[1].mxu1 }
 0x3d2   :  { %v4322_v45 = vadd.f32 %v7464_v21, %v4220_v42 }
 0x3d3   :  { %v4339_v50 = vmax.f32 %v4323_v53, 0.0 }
 0x3d4   :  { %v4338_v61 = vmax.f32 %v4322_v45, 0.0  ;;  %v5758_v62 = vpop.f32.mrb[2].mxu1 }
 0x3d5   :  { %v4355_v57 = vsel %vm21_vm0, %v4339_v50, 0.0  ;;  %v4325_v1 = vadd.f32 %v5758_v62, %v7464_v21  ;;  %v4230_v2 = vpop.f32.mrb[3].mxu1 }
 0x3d6   :  { %v4354_v3 = vsel %vm21_vm0, %v4338_v61, 0.0  ;;  %v4324_v7 = vadd.f32 %v7464_v21, %v4230_v2 }
 0x3d7   :  { %v4356_v18 = vadd.f32 %v4355_v57, %v4354_v3  ;;  %v4341_v9 = vmax.f32 %v4325_v1, 0.0 }
 0x3d8   :  { %v4340_v12 = vmax.f32 %v4324_v7, 0.0  ;;  %v5761_v51 = vpop.f32.mrb[4].mxu1 }
 0x3d9   :  { %v4327_v13 = vadd.f32 %v5761_v51, %v7464_v21  ;;  %v4240_v14 = vpop.f32.mrb[5].mxu1  ;;  %v4359_v17 = vsel %vm21_vm0, %v4341_v9, 0.0 }
 0x3da   :  { %v4357_v16 = vsel %vm21_vm0, %v4340_v12, 0.0  ;;  %v4326_v63 = vadd.f32 %v7464_v21, %v4240_v14 }
 0x3db   :  { %v4358_v28 = vadd.f32 %v4357_v16, %v4356_v18  ;;  %v4343_v25 = vmax.f32 %v4327_v13, 0.0 }
 0x3dc   :  { %v4342_v26 = vmax.f32 %v4326_v63, 0.0  ;;  %v5764_v27 = vpop.f32.mrb[6].mxu1 }
 0x3dd   :  { %v4360_v32 = vadd.f32 %v4359_v17, %v4358_v28  ;;  %v4329_v37 = vadd.f32 %v5764_v27, %v7464_v21  ;;  %v4250_v60 = vpop.f32.mrb[7].mxu1  ;;  %v4363_v33 = vsel %vm21_vm0, %v4343_v25, 0.0 }
 0x3de   :  { %v4361_v41 = vsel %vm21_vm0, %v4342_v26, 0.0  ;;  %v4328_v46 = vadd.f32 %v7464_v21, %v4250_v60 }
 0x3df   :  { %v4362_v47 = vadd.f32 %v4361_v41, %v4360_v32  ;;  %v4345_v49 = vmax.f32 %v4329_v37, 0.0 }
 0x3e0   :  { %v4344_v52 = vmax.f32 %v4328_v46, 0.0  ;;  %v5767_v54 = vpop.f32.mrb[8].mxu1 }
 0x3e1   :  { %v4364_v6 = vadd.f32 %v4363_v33, %v4362_v47  ;;  %v4331_v8 = vadd.f32 %v5767_v54, %v7464_v21  ;;  %v4260_v10 = vpop.f32.mrb[9].mxu1  ;;  %v4367_v22 = vsel %vm21_vm0, %v4345_v49, 0.0 }
 0x3e2   :  { %v4365_v11 = vsel %vm21_vm0, %v4344_v52, 0.0  ;;  %v4330_v15 = vadd.f32 %v7464_v21, %v4260_v10 }
 0x3e3   :  { %v4366_v19 = vadd.f32 %v4365_v11, %v4364_v6  ;;  %v4347_v20 = vmax.f32 %v4331_v8, 0.0 }
 0x3e4   :  { %v4346_v24 = vmax.f32 %v4330_v15, 0.0  ;;  %v5770_v34 = vpop.f32.mrb[10].mxu1 }
 0x3e5   :  { %v4368_v30 = vadd.f32 %v4367_v22, %v4366_v19  ;;  %v4376_v38 = vsel %vm21_vm0, %v4347_v20, 0.0  ;;  %v4333_v39 = vadd.f32 %v5770_v34, %v7464_v21  ;;  %v4270_v43 = vpop.f32.mrb[11].mxu1 }
 0x3e6   :  { %v4375_v44 = vsel %vm21_vm0, %v4346_v24, 0.0  ;;  %v4332_v48 = vadd.f32 %v7464_v21, %v4270_v43 }
 0x3e7   :  { %v4377_v31 = vadd.f32 %v4376_v38, %v4375_v44  ;;  %v4349_v55 = vmax.f32 %v4333_v39, 0.0  ;;  %v4369_v36 = vrot.slane %v4368_v30, 4 }
 0x3e8   :  { %v4348_v56 = vmax.f32 %v4332_v48, 0.0  ;;  %v5773_v5 = vpop.f32.mrb[12].mxu1 }
 0x3e9   :  { %v4335_v58 = vadd.f32 %v5773_v5, %v7464_v21  ;;  %v4280_v59 = vpop.f32.mrb[13].mxu1  ;;  %v4380_v0 = vsel %vm21_vm0, %v4349_v55, 0.0  ;;  %v4370_v57 = vadd.f32 %v4369_v36, %v4368_v30 }
 0x3ea   :  { %v4378_v29 = vsel %vm21_vm0, %v4348_v56, 0.0  ;;  %v4334_v35 = vadd.f32 %v7464_v21, %v4280_v59 }
 0x3eb   :  { %v4379_v40 = vadd.f32 %v4378_v29, %v4377_v31  ;;  %v4351_v4 = vmax.f32 %v4335_v58, 0.0  ;;  %v4371_v51 = vrot.slane %v4370_v57, 2 }
 0x3ec   :  { %v4350_v23 = vmax.f32 %v4334_v35, 0.0  ;;  %v5776_v53 = vpop.f32.mrb[14].mxu1 }
 0x3ed   :  { %v4381_v42 = vadd.f32 %v4380_v0, %v4379_v40  ;;  %v4337_v45 = vadd.f32 %v5776_v53, %v7464_v21  ;;  %v4290_v50 = vpop.f32.mrb[15].mxu1  ;;  %v4384_v2 = vsel %vm21_vm0, %v4351_v4, 0.0  ;;  %v4372_v63 = vadd.f32 %v4371_v51, %v4370_v57 }
 0x3ee   :  { %v4382_v61 = vsel %vm21_vm0, %v4350_v23, 0.0  ;;  %v4336_v62 = vadd.f32 %v7464_v21, %v4290_v50 }
 0x3ef   :  { %v4383_v1 = vadd.f32 %v4382_v61, %v4381_v42  ;;  %v4353_v3 = vmax.f32 %v4337_v45, 0.0  ;;  %v4373_v17 = vrot.slane %v4372_v63, 1 }
 0x3f0   :  { %v4352_v7 = vmax.f32 %v4336_v62, 0.0 }
 0x3f1   :  { %v4385_v18 = vadd.f32 %v4384_v2, %v4383_v1  ;;  %v4388_v13 = vsel %vm21_vm0, %v4353_v3, 0.0  ;;  %v4374_v26 = vadd.f32 %v4373_v17, %v4372_v63 }
 0x3f2   :  { %v4386_v9 = vsel %vm21_vm0, %v4352_v7, 0.0 }
 0x3f3   :  { %v4387_v12 = vadd.f32 %v4386_v9, %v4385_v18  ;;  %v4397_v37 = vmul.f32 0.015625, %v4374_v26 }
 0x3f5   :  { %v4389_v14 = vadd.f32 %v4388_v13, %v4387_v12 }
 0x3f7   :  { %v4390_v16 = vrot.slane %v4389_v14, 4 }
 0x3f9   :  { %v4391_v28 = vadd.f32 %v4390_v16, %v4389_v14 }
 0x3fb   :  { %v4392_v25 = vrot.slane %v4391_v28, 2 }
 0x3fd   :  { %v4393_v21 = vadd.f32 %v4392_v25, %v4391_v28 }
 0x3ff   :  { %v4394_v27 = vrot.slane %v4393_v21, 1 }
 0x401   :  { %v4395_v32 = vadd.f32 %v4394_v27, %v4393_v21 }
 0x403   :  { %v4398_v60 = vmul.f32 0.015625, %v4395_v32 }
 0x405   :  { %v4402_v41 = vsel %vm4401_vm3, %v4398_v60, %v4397_v37 }
 0x406   :  { %v4404_v46 = vsel %vm23_vm1, %v4402_v41, -inf }
 0x407   :  { %4405 = vmax.xlane.f32.xlu0 %v4404_v46 }
 0x494   :  { %v4406_v47 = vpop.xlane.xlu0 %4405 }
 0x495   :  { %v4408_v33 = vrot.slane %v4406_v47, 1  ;;  %v4411_v49 = vsub.f32 %v4397_v37, %v4406_v47 }
 0x497   :  { %v4412_v52 = vsub.f32 %v4398_v60, %v4408_v33  ;;  %v4413_v54 = vmul.f32 1.442695, %v4411_v49 }
 0x499   :  { %v4415_v6 = vmul.f32 1.442695, %v4412_v52 }
 0x49b   :  { %6179 = vpow2.f32 %v4415_v6 }
 0x49c   :  { %6181 = vpow2.f32 %v4413_v54 }
 0x4a5   :  { %v6180_v8 = vpop.eup %6179 }
 0x4a6   :  { %v4419_v10 = vrot.slane %v6180_v8, 7  ;;  %v6182_v11 = vpop.eup %6181 }
 0x4a8   :  { %v4420_v15 = vsel %vm4401_vm3, %v4419_v10, %v6182_v11 }
 0x4a9   :  { %v4422_v19 = vsel %vm23_vm1, %v4420_v15, 0.0 }
 0x4aa   :  { %4423 = vadd.xlane.f32.xlu0 %v4422_v19 }
 0x537   :  { %v4424_v20 = vpop.xlane.xlu0 %4423 }
 0x538   :  { %6183 = vrcp.f32 %v4424_v20 }
 0x542   :  { %v6184_v22 = vpop.eup %6183 }
 0x543   :  { %v4427_v24 = vrot.slane %v6184_v22, 1  ;;  %v4430_v30 = vmul.f32 %v6184_v22, %v6182_v11 }
 0x545   :  { %v4431_v34 = vmul.f32 %v6180_v8, %v4427_v24 }
 0x547   :  { %v4434_v38 = vrot.slane %v4431_v34, 7 }
 0x549   :  { %v4435_v39 = vsel %vm4401_vm3, %v4434_v38, %v4430_v30 }
 0x54a   :  { %4437 = vst.msk [vmem:[#allocation4] sm:$0x3] %vm23_vm1, %v4435_v39 }
 0x54b   :  { %6196 = shalt.err (!%p6193_p4)
}
 0x54c   :  { %s6197_s11 = scalar_lea.hbm %s7521_s5, 32 }
 0x54d   :  { %p6198_p5 = scmp.ne.s32.totalorder %s7521_s5, %s6197_s11  ;;  %p6201_p6 = scmp.lt.u32.totalorder %s6197_s11, %s7521_s5 }
 0x54f   :  { %p6203_p7 = pnand %p6201_p6, %p6198_p5 }
 0x551   :  { %6206 = shalt.err (!%p6203_p7)
}
 0x552   :  { %4447 = dma.vmem_to_hbm [thread:$0]  %s4445_s8, 32, %s7521_s5, [#allocation5]  }
 0x553   :  { %6207 = dma.done.wait [#allocation5], 32  }
 0x554   :  { %6208 = vsyncadd [#allocation5], 4294967264 }
 0x555   :  { %4451 = vsyncpa [#allocation5], 1 }

</bundles_post_ra>
